<compile_context>
chip_gen: v7x
topology: tpu7x:2x2x1
jax: 0.10.0
libtpu: 0.0.40
codegen_flags: <defaults>
</compile_context>

<pallas_src>
import functools

import jax
import jax.numpy as jnp
import numpy as np
from jax import lax
from jax.experimental import pallas as pl
from jax.experimental.pallas import tpu as pltpu

# tap t = dy*3 + dx  ->  spatial offset (oy, ox) = (dy-1, dx-1)
_TAPS = tuple((dy - 1, dx - 1) for dy in range(3) for dx in range(3))


# --------------------------------- kernel -----------------------------------

def _tfam_kernel(x_ref, dw_ref, sa_ref, small_ref, fused_ref, w_ref, *,
                 H, W, C, HID, WPH,
                 off_pw, off_wp1, off_wp2, off_ca1, off_ca2):
    HW = H * W
    C2 = 2 * C

    x8 = x_ref[...].astype(jnp.float32)            # (Bb, 2C, HW): rgb 0:C, tir C:2C
    small = small_ref[...]                         # (R, 128) packed small params

    def shifted(v, oy, ox):
        """result[..., p] = v[..., p + oy*W + ox] (wrapping; mask is in the tap table)."""
        off = oy * W + ox
        return v if off == 0 else pltpu.roll(v, shift=(-off) % HW, axis=2)

    # ---- fused depthwise 3x3 (rgb+tir packed, boundary masks folded into dw_ref) ----
    acc = x8 * dw_ref[4][None]                     # center tap (0,0)
    for t, (oy, ox) in enumerate(_TAPS):
        if t == 4:
            continue
        acc = acc + shifted(x8, oy, ox) * dw_ref[t][None]

    # ---- block-diagonal pointwise 1x1 (BN scale folded) + folded BN bias + ReLU ----
    w_pw = small[off_pw:off_pw + C2, 0:C2]         # (2C, 2C)
    b_pw = small[off_pw:off_pw + C2, C2:C2 + 1]    # (2C, 1)
    y = None
    for i in range(C2):
        term = acc[:, i:i + 1, :] * w_pw[:, i:i + 1][None]
        y = term if y is None else y + term
    y = jnp.maximum(y + b_pw[None], 0.0)           # (Bb, 2C, HW)

    rgb_t = y[:, :C, :]
    tir_t = y[:, C:, :]
    fusion_in = rgb_t + tir_t                      # (Bb, C, HW)

    # ---- weight predictor: 1x1 (BN folded) -> ReLU -> 1x1 -> softmax over 2 ch ----
    w1 = small[off_wp1:off_wp1 + WPH, 0:C]         # (WPH, C)
    b1 = small[off_wp1:off_wp1 + WPH, C:C + 1]     # (WPH, 1)
    h = None
    for i in range(C):
        term = fusion_in[:, i:i + 1, :] * w1[:, i:i + 1][None]
        h = term if h is None else h + term
    h = jnp.maximum(h + b1[None], 0.0)             # (Bb, WPH, HW)

    w2 = small[off_wp2:off_wp2 + WPH, 0:2]         # (WPH, 2)  (= wp2.T)
    # co=2, ci=16: full-slab multiply + sublane (XLU) reduce instead of 16 VALU MACs
    logit0 = jnp.sum(h * w2[:, 0:1][None], axis=1, keepdims=True)
    logit1 = jnp.sum(h * w2[:, 1:2][None], axis=1, keepdims=True)
    m = jnp.maximum(logit0, logit1)
    e0 = jnp.exp(logit0 - m)
    e1 = jnp.exp(logit1 - m)
    inv = pl.reciprocal(e0 + e1, approx=False)     # exact: weights sum to 1
    rgb_w = e0 * inv                               # (Bb, 1, HW)
    tir_w = e1 * inv

    fused = rgb_t * rgb_w + tir_t * tir_w          # (Bb, C, HW)

    # ---- channel attention: GAP -> FC -> ReLU -> FC -> sigmoid ----
    a1 = small[off_ca1:off_ca1 + HID, 0:C]         # (HID, C)
    a2 = small[off_ca2:off_ca2 + C, 0:HID]         # (C, HID)
    pooled = jnp.sum(fused, axis=2, keepdims=True) * (1.0 / HW)   # (Bb, C, 1)
    y1 = None
    for i in range(C):
        term = pooled[:, i:i + 1, :] * a1[:, i:i + 1][None]
        y1 = term if y1 is None else y1 + term
    y1 = jnp.maximum(y1, 0.0)                      # (Bb, HID, 1)
    y2 = None
    for j in range(HID):
        term = y1[:, j:j + 1, :] * a2[:, j:j + 1][None]
        y2 = term if y2 is None else y2 + term
    fused = fused * jax.nn.sigmoid(y2)             # broadcast (Bb, C, 1)

    # ---- spatial attention: [mean_c, max_c] stacked -> 3x3 (masks folded) -> sigmoid ----
    ch = lax.broadcasted_iota(jnp.int32, (1, 2, 1), 1)
    avg = jnp.mean(fused, axis=1, keepdims=True)   # (Bb, 1, HW)
    mx = jnp.max(fused, axis=1, keepdims=True)
    stacked = jnp.where(ch == 0, avg, mx)          # (Bb, 2, HW), no concat
    sacc = stacked * sa_ref[4][None]
    for t, (oy, ox) in enumerate(_TAPS):
        if t == 4:
            continue
        sacc = sacc + shifted(stacked, oy, ox) * sa_ref[t][None]
    att = jnp.sum(sacc, axis=1, keepdims=True)     # (Bb, 1, HW)
    fused = fused * jax.nn.sigmoid(att)

    fused_ref[...] = fused.astype(fused_ref.dtype)
    w_ref[...] = jnp.where(ch == 0, rgb_w, tir_w).astype(w_ref.dtype)


# --------------------------------- wrapper ----------------------------------

def _fold_bn(bn, eps=1e-5):
    gamma, beta, mean, var = bn
    scale = gamma / jnp.sqrt(var + eps)
    return scale, beta - mean * scale


def _tap_masks(H, W):
    """(9, H*W) f32 masks: mask[t, p] = 1 iff the source pixel of tap t is in-bounds."""
    HW = H * W
    p = np.arange(HW)
    r, c = p // W, p % W
    masks = np.zeros((9, HW), np.float32)
    for t, (oy, ox) in enumerate(_TAPS):
        ok = (r + oy >= 0) & (r + oy < H) & (c + ox >= 0) & (c + ox < W)
        masks[t] = ok.astype(np.float32)
    return masks


def _vmem_capacity_bytes():
    try:
        return int(pltpu.get_tpu_info().vmem_capacity_bytes)
    except Exception:
        return 64 << 20          # conservative fallback (v7x per-core VMEM)


def tfam_pallas(rgb, tir, p, *, block_b=None, vmem_limit_bytes=None):
    B, C, H, W = rgb.shape
    HW = H * W
    C2 = 2 * C
    WPH = p["wp1"].shape[0]      # weight-predictor hidden width (16 in the module)
    HID = p["ca1"].shape[0]      # channel-attention hidden width

    # ---- fold BN (eval mode) and build lane-dense parameter tables ----
    s_rgb, b_rgb = _fold_bn(p["bn_rgb"])
    s_tir, b_tir = _fold_bn(p["bn_tir"])
    s_wp, b_wp = _fold_bn(p["bn_wp"])

    masks = jnp.asarray(_tap_masks(H, W))                                  # (9, HW)
    dw_taps = jnp.concatenate([p["dw_rgb"].reshape(C, 9),
                               p["dw_tir"].reshape(C, 9)], axis=0)         # (2C, 9)
    dw_tab = dw_taps.T[:, :, None] * masks[:, None, :]                     # (9, 2C, HW)
    sa_tab = p["sa"].reshape(2, 9).T[:, :, None] * masks[:, None, :]       # (9, 2, HW)

    # block-diagonal pointwise with BN scale folded into the rows; BN bias kept
    pw = jnp.zeros((C2, C2), jnp.float32)
    pw = pw.at[:C, :C].set(p["pw_rgb"] * s_rgb[:, None])
    pw = pw.at[C:, C:].set(p["pw_tir"] * s_tir[:, None])
    pw_bias = jnp.concatenate([b_rgb, b_tir])                              # (2C,)
    wp1 = p["wp1"] * s_wp[:, None]                                         # (WPH, C)

    # single packed small-parameter table -> one tiny DMA instead of ~8
    off_pw, off_wp1 = 0, C2
    off_wp2 = off_wp1 + WPH
    off_ca1 = off_wp2 + WPH
    off_ca2 = off_ca1 + HID
    rows = off_ca2 + C
    R = pl.cdiv(rows, 8) * 8
    assert max(C2 + 1, C + 1, HID, WPH, 2) <= 128, "param packing assumes small C"
    # TODO(synk): for large in_channels route the 1x1 convs through a reshaped 2-D MXU matmul instead of the packed VPU MAC loops.
    small = jnp.zeros((R, 128), jnp.float32)

    def put(tab, r, c, blk):
        return lax.dynamic_update_slice(tab, blk.astype(jnp.float32), (r, c))

    small = put(small, off_pw, 0, pw)
    small = put(small, off_pw, C2, pw_bias[:, None])
    small = put(small, off_wp1, 0, wp1)
    small = put(small, off_wp1, C, b_wp[:, None])
    small = put(small, off_wp2, 0, p["wp2"].T)
    small = put(small, off_ca1, 0, p["ca1"])
    small = put(small, off_ca2, 0, p["ca2"])

    # ---- block size / grid: fill VMEM; default >=2 steps so both v7x TCs get work ----
    vmem_cap = _vmem_capacity_bytes()
    if vmem_limit_bytes is None:
        vmem_limit_bytes = min(max(vmem_cap - (16 << 20), 32 << 20), 100 << 20)
    param_bytes = 2 * ((9 * C2 + 9 * 8) * HW + R * 128) * 4
    # per-image live-set estimate (f32 rows of width HW): double-buffered in/out
    # blocks + packed-slab temporaries + weight-predictor hidden + misc slabs
    rows_per_img = 2 * C2 + 2 * (C + 2) + 10 * C2 + 3 * WPH + 8
    bytes_per_img = rows_per_img * HW * 4
    max_b = max(1, int((vmem_limit_bytes - param_bytes - (4 << 20)) // bytes_per_img))
    if block_b is None:
        block_b = max(1, min(max_b, pl.cdiv(B, 2)))   # single-TC chips: pass block_b=B
    else:
        block_b = max(1, min(block_b, max_b, B))
    grid = pl.cdiv(B, block_b)
    Bp = grid * block_b

    # one packed (B, 2C, HW) input slab (HBM-cheap; the kernel is VPU-bound)
    x8 = jnp.concatenate([rgb.reshape(B, C, HW), tir.reshape(B, C, HW)], axis=1)
    if Bp != B:   # pad the ragged batch instead of collapsing block_b to a divisor
        x8 = jnp.concatenate([x8, jnp.zeros((Bp - B, C2, HW), x8.dtype)], axis=0)

    def batch_spec(ch):
        return pl.BlockSpec((block_b, ch, HW), lambda b: (b, 0, 0))

    def full_spec(x):
        zero = (0,) * x.ndim
        return pl.BlockSpec(x.shape, lambda b, z=zero: z)

    kernel = functools.partial(
        _tfam_kernel, H=H, W=W, C=C, HID=HID, WPH=WPH,
        off_pw=off_pw, off_wp1=off_wp1, off_wp2=off_wp2,
        off_ca1=off_ca1, off_ca2=off_ca2)

    fused_flat, w_flat = pl.pallas_call(
        kernel,
        out_shape=(jax.ShapeDtypeStruct((Bp, C, HW), rgb.dtype),
                   jax.ShapeDtypeStruct((Bp, 2, HW), rgb.dtype)),
        grid_spec=pltpu.PrefetchScalarGridSpec(
            num_scalar_prefetch=0,
            grid=(grid,),
            in_specs=[batch_spec(C2), full_spec(dw_tab),
                      full_spec(sa_tab), full_spec(small)],
            out_specs=(batch_spec(C), batch_spec(2))),
        compiler_params=pltpu.CompilerParams(
            dimension_semantics=("parallel",),
            vmem_limit_bytes=int(vmem_limit_bytes)),
    )(x8, dw_tab, sa_tab, small)

    fused = fused_flat[:B].reshape(B, C, H, W)
    rgb_w = w_flat[:B, 0:1, :].reshape(B, 1, H, W)
    tir_w = w_flat[:B, 1:2, :].reshape(B, 1, H, W)
    return fused, rgb_w, tir_w


# ------------------------- pure-JAX reference --------------------------------

def tfam_ref(rgb, tir, p):
    def fold(bn, eps=1e-5):
        g, b, m, v = bn
        s = g / jnp.sqrt(v + eps)
        return s, b - m * s

    def dwconv(x, w):
        return lax.conv_general_dilated(
            x, w, window_strides=(1, 1), padding=((1, 1), (1, 1)),
            dimension_numbers=("NCHW", "OIHW", "NCHW"),
            feature_group_count=x.shape[1])

    def conv1x1(x, w):
        return jnp.einsum("oc,bchw->bohw", w, x)

    def transform(x, dw, pw, bn):
        s, b = fold(bn)
        y = conv1x1(dwconv(x, dw), pw)
        y = y * s[None, :, None, None] + b[None, :, None, None]
        return jnp.maximum(y, 0.0)

    rgb_t = transform(rgb, p["dw_rgb"], p["pw_rgb"], p["bn_rgb"])
    tir_t = transform(tir, p["dw_tir"], p["pw_tir"], p["bn_tir"])
    fusion_in = rgb_t + tir_t

    s, b = fold(p["bn_wp"])
    h = jnp.maximum(conv1x1(fusion_in, p["wp1"]) * s[None, :, None, None]
                    + b[None, :, None, None], 0.0)
    weights = jax.nn.softmax(conv1x1(h, p["wp2"]), axis=1)
    rgb_w = weights[:, 0:1]
    tir_w = weights[:, 1:2]
    fused = rgb_t * rgb_w + tir_t * tir_w

    pooled = jnp.mean(fused, axis=(2, 3))                       # (B, C)
    y1 = jnp.maximum(pooled @ p["ca1"].T, 0.0)
    y2 = jax.nn.sigmoid(y1 @ p["ca2"].T)
    fused = fused * y2[:, :, None, None]

    avg = jnp.mean(fused, axis=1, keepdims=True)
    mx = jnp.max(fused, axis=1, keepdims=True)
    att = lax.conv_general_dilated(
        jnp.concatenate([avg, mx], axis=1), p["sa"], (1, 1), ((1, 1), (1, 1)),
        dimension_numbers=("NCHW", "OIHW", "NCHW"))
    att = jax.nn.sigmoid(att)
    return fused * att, rgb_w, tir_w


# -------------------------------- params -------------------------------------

def init_params(key, C):
    hidden = max(C // 16, 8)
    ks = list(jax.random.split(key, 24))
    it = iter(ks)

    def nrm(shape, s=0.3):
        return jax.random.normal(next(it), shape, jnp.float32) * s

    def bn(n):
        return (1.0 + nrm((n,), 0.1),           # gamma
                nrm((n,), 0.1),                 # beta
                nrm((n,), 0.1),                 # running_mean
                1.0 + jnp.abs(nrm((n,), 0.1)))  # running_var

    return {
        "dw_rgb": nrm((C, 1, 3, 3)), "pw_rgb": nrm((C, C)), "bn_rgb": bn(C),
        "dw_tir": nrm((C, 1, 3, 3)), "pw_tir": nrm((C, C)), "bn_tir": bn(C),
        "wp1": nrm((16, C)), "bn_wp": bn(16), "wp2": nrm((2, 16)),
        "ca1": nrm((hidden, C)), "ca2": nrm((C, hidden)),
        "sa": nrm((1, 2, 3, 3)),
    }


# --------------------------------- main ---------------------------------------

if __name__ == "__main__":
    B, C, H, W = 2, 4, 16, 16
    key = jax.random.PRNGKey(0)
    k_rgb, k_tir, k_p = jax.random.split(key, 3)
    rgb = jax.random.normal(k_rgb, (B, C, H, W), jnp.float32)
    tir = jax.random.normal(k_tir, (B, C, H, W), jnp.float32)
    params = init_params(k_p, C)

    fused, rw, tw = jax.block_until_ready(tfam_pallas(rgb, tir, params))
    fused_r, rw_r, tw_r = tfam_ref(rgb, tir, params)

    np.testing.assert_allclose(np.asarray(fused), np.asarray(fused_r), rtol=2e-3, atol=2e-3)
    np.testing.assert_allclose(np.asarray(rw), np.asarray(rw_r), rtol=2e-3, atol=2e-3)
    np.testing.assert_allclose(np.asarray(tw), np.asarray(tw_r), rtol=2e-3, atol=2e-3)
    print("KERNEL_OK")
</pallas_src>

<mosaic_0001>
module attributes {stable_mosaic.version = 11 : i64} {
  func.func @_tfam_kernel(%arg0: i32, %arg1: memref<1x8x256xf32, #tpu.memory_space<vmem>>, %arg2: memref<9x8x256xf32, #tpu.memory_space<vmem>>, %arg3: memref<9x2x256xf32, #tpu.memory_space<vmem>>, %arg4: memref<56x128xf32, #tpu.memory_space<vmem>>, %arg5: memref<1x4x256xf32, #tpu.memory_space<vmem>>, %arg6: memref<1x2x256xf32, #tpu.memory_space<vmem>>) attributes {dimension_semantics = [#tpu.dimension_semantics<parallel>], iteration_bounds = array<i64: 2>, scalar_prefetch = 0 : i64, scratch_operands = 0 : i64, tpu.core_type = #tpu.core_type<tc>, window_params = [{transform_indices = @transform_0, window_bounds = array<i64: 1, 8, 256>}, {pipeline_mode = #tpu.pipeline_mode<synchronous>, transform_indices = @transform_1, window_bounds = array<i64: 9, 8, 256>}, {pipeline_mode = #tpu.pipeline_mode<synchronous>, transform_indices = @transform_2, window_bounds = array<i64: 9, 2, 256>}, {pipeline_mode = #tpu.pipeline_mode<synchronous>, transform_indices = @transform_3, window_bounds = array<i64: 56, 128>}, {transform_indices = @transform_4, window_bounds = array<i64: 1, 4, 256>}, {transform_indices = @transform_5, window_bounds = array<i64: 1, 2, 256>}]} {
    %c0 = arith.constant 0 : index
    %c0_0 = arith.constant 0 : index
    %c0_1 = arith.constant 0 : index
    %0 = vector.load %arg1[%c0, %c0_0, %c0_1] : memref<1x8x256xf32, #tpu.memory_space<vmem>>, vector<1x8x256xf32>
    %c0_2 = arith.constant 0 : index
    %c0_3 = arith.constant 0 : index
    %1 = vector.load %arg4[%c0_2, %c0_3] : memref<56x128xf32, #tpu.memory_space<vmem>>, vector<56x128xf32>
    %c4 = arith.constant 4 : index
    %c0_4 = arith.constant 0 : index
    %c0_5 = arith.constant 0 : index
    %2 = vector.load %arg2[%c4, %c0_4, %c0_5] : memref<9x8x256xf32, #tpu.memory_space<vmem>>, vector<1x8x256xf32>
    %3 = vector.shape_cast %2 : vector<1x8x256xf32> to vector<8x256xf32>
    %4 = vector.shape_cast %3 : vector<8x256xf32> to vector<1x8x256xf32>
    %5 = arith.mulf %0, %4 : vector<1x8x256xf32>
    %c17_i32 = arith.constant 17 : i32
    %6 = tpu.dynamic_rotate %0 by %c17_i32 dim 2 : vector<1x8x256xf32>, i32 -> vector<1x8x256xf32>
    %c0_6 = arith.constant 0 : index
    %c0_7 = arith.constant 0 : index
    %c0_8 = arith.constant 0 : index
    %7 = vector.load %arg2[%c0_6, %c0_7, %c0_8] : memref<9x8x256xf32, #tpu.memory_space<vmem>>, vector<1x8x256xf32>
    %8 = vector.shape_cast %7 : vector<1x8x256xf32> to vector<8x256xf32>
    %9 = vector.shape_cast %8 : vector<8x256xf32> to vector<1x8x256xf32>
    %10 = arith.mulf %6, %9 : vector<1x8x256xf32>
    %11 = arith.addf %5, %10 : vector<1x8x256xf32>
    %c16_i32 = arith.constant 16 : i32
    %12 = tpu.dynamic_rotate %0 by %c16_i32 dim 2 : vector<1x8x256xf32>, i32 -> vector<1x8x256xf32>
    %c1 = arith.constant 1 : index
    %c0_9 = arith.constant 0 : index
    %c0_10 = arith.constant 0 : index
    %13 = vector.load %arg2[%c1, %c0_9, %c0_10] : memref<9x8x256xf32, #tpu.memory_space<vmem>>, vector<1x8x256xf32>
    %14 = vector.shape_cast %13 : vector<1x8x256xf32> to vector<8x256xf32>
    %15 = vector.shape_cast %14 : vector<8x256xf32> to vector<1x8x256xf32>
    %16 = arith.mulf %12, %15 : vector<1x8x256xf32>
    %17 = arith.addf %11, %16 : vector<1x8x256xf32>
    %c15_i32 = arith.constant 15 : i32
    %18 = tpu.dynamic_rotate %0 by %c15_i32 dim 2 : vector<1x8x256xf32>, i32 -> vector<1x8x256xf32>
    %c2 = arith.constant 2 : index
    %c0_11 = arith.constant 0 : index
    %c0_12 = arith.constant 0 : index
    %19 = vector.load %arg2[%c2, %c0_11, %c0_12] : memref<9x8x256xf32, #tpu.memory_space<vmem>>, vector<1x8x256xf32>
    %20 = vector.shape_cast %19 : vector<1x8x256xf32> to vector<8x256xf32>
    %21 = vector.shape_cast %20 : vector<8x256xf32> to vector<1x8x256xf32>
    %22 = arith.mulf %18, %21 : vector<1x8x256xf32>
    %23 = arith.addf %17, %22 : vector<1x8x256xf32>
    %c1_i32 = arith.constant 1 : i32
    %24 = tpu.dynamic_rotate %0 by %c1_i32 dim 2 : vector<1x8x256xf32>, i32 -> vector<1x8x256xf32>
    %c3 = arith.constant 3 : index
    %c0_13 = arith.constant 0 : index
    %c0_14 = arith.constant 0 : index
    %25 = vector.load %arg2[%c3, %c0_13, %c0_14] : memref<9x8x256xf32, #tpu.memory_space<vmem>>, vector<1x8x256xf32>
    %26 = vector.shape_cast %25 : vector<1x8x256xf32> to vector<8x256xf32>
    %27 = vector.shape_cast %26 : vector<8x256xf32> to vector<1x8x256xf32>
    %28 = arith.mulf %24, %27 : vector<1x8x256xf32>
    %29 = arith.addf %23, %28 : vector<1x8x256xf32>
    %c255_i32 = arith.constant 255 : i32
    %30 = tpu.dynamic_rotate %0 by %c255_i32 dim 2 : vector<1x8x256xf32>, i32 -> vector<1x8x256xf32>
    %c5 = arith.constant 5 : index
    %c0_15 = arith.constant 0 : index
    %c0_16 = arith.constant 0 : index
    %31 = vector.load %arg2[%c5, %c0_15, %c0_16] : memref<9x8x256xf32, #tpu.memory_space<vmem>>, vector<1x8x256xf32>
    %32 = vector.shape_cast %31 : vector<1x8x256xf32> to vector<8x256xf32>
    %33 = vector.shape_cast %32 : vector<8x256xf32> to vector<1x8x256xf32>
    %34 = arith.mulf %30, %33 : vector<1x8x256xf32>
    %35 = arith.addf %29, %34 : vector<1x8x256xf32>
    %c241_i32 = arith.constant 241 : i32
    %36 = tpu.dynamic_rotate %0 by %c241_i32 dim 2 : vector<1x8x256xf32>, i32 -> vector<1x8x256xf32>
    %c6 = arith.constant 6 : index
    %c0_17 = arith.constant 0 : index
    %c0_18 = arith.constant 0 : index
    %37 = vector.load %arg2[%c6, %c0_17, %c0_18] : memref<9x8x256xf32, #tpu.memory_space<vmem>>, vector<1x8x256xf32>
    %38 = vector.shape_cast %37 : vector<1x8x256xf32> to vector<8x256xf32>
    %39 = vector.shape_cast %38 : vector<8x256xf32> to vector<1x8x256xf32>
    %40 = arith.mulf %36, %39 : vector<1x8x256xf32>
    %41 = arith.addf %35, %40 : vector<1x8x256xf32>
    %c240_i32 = arith.constant 240 : i32
    %42 = tpu.dynamic_rotate %0 by %c240_i32 dim 2 : vector<1x8x256xf32>, i32 -> vector<1x8x256xf32>
    %c7 = arith.constant 7 : index
    %c0_19 = arith.constant 0 : index
    %c0_20 = arith.constant 0 : index
    %43 = vector.load %arg2[%c7, %c0_19, %c0_20] : memref<9x8x256xf32, #tpu.memory_space<vmem>>, vector<1x8x256xf32>
    %44 = vector.shape_cast %43 : vector<1x8x256xf32> to vector<8x256xf32>
    %45 = vector.shape_cast %44 : vector<8x256xf32> to vector<1x8x256xf32>
    %46 = arith.mulf %42, %45 : vector<1x8x256xf32>
    %47 = arith.addf %41, %46 : vector<1x8x256xf32>
    %c239_i32 = arith.constant 239 : i32
    %48 = tpu.dynamic_rotate %0 by %c239_i32 dim 2 : vector<1x8x256xf32>, i32 -> vector<1x8x256xf32>
    %c8 = arith.constant 8 : index
    %c0_21 = arith.constant 0 : index
    %c0_22 = arith.constant 0 : index
    %49 = vector.load %arg2[%c8, %c0_21, %c0_22] : memref<9x8x256xf32, #tpu.memory_space<vmem>>, vector<1x8x256xf32>
    %50 = vector.shape_cast %49 : vector<1x8x256xf32> to vector<8x256xf32>
    %51 = vector.shape_cast %50 : vector<8x256xf32> to vector<1x8x256xf32>
    %52 = arith.mulf %48, %51 : vector<1x8x256xf32>
    %53 = arith.addf %47, %52 : vector<1x8x256xf32>
    %54 = vector.extract_strided_slice %1 {offsets = [0, 0], sizes = [8, 8], strides = [1, 1]} : vector<56x128xf32> to vector<8x8xf32>
    %55 = vector.extract_strided_slice %1 {offsets = [0, 8], sizes = [8, 1], strides = [1, 1]} : vector<56x128xf32> to vector<8x1xf32>
    %56 = vector.extract_strided_slice %53 {offsets = [0, 0, 0], sizes = [1, 1, 256], strides = [1, 1, 1]} : vector<1x8x256xf32> to vector<1x1x256xf32>
    %57 = vector.extract_strided_slice %54 {offsets = [0, 0], sizes = [8, 1], strides = [1, 1]} : vector<8x8xf32> to vector<8x1xf32>
    %58 = vector.shape_cast %57 : vector<8x1xf32> to vector<1x8x1xf32>
    %59 = vector.broadcast %56 : vector<1x1x256xf32> to vector<1x8x256xf32>
    %60 = vector.broadcast %58 : vector<1x8x1xf32> to vector<1x8x256xf32>
    %61 = arith.mulf %59, %60 : vector<1x8x256xf32>
    %62 = vector.extract_strided_slice %53 {offsets = [0, 1, 0], sizes = [1, 1, 256], strides = [1, 1, 1]} : vector<1x8x256xf32> to vector<1x1x256xf32>
    %63 = vector.extract_strided_slice %54 {offsets = [0, 1], sizes = [8, 1], strides = [1, 1]} : vector<8x8xf32> to vector<8x1xf32>
    %64 = vector.shape_cast %63 : vector<8x1xf32> to vector<1x8x1xf32>
    %65 = vector.broadcast %62 : vector<1x1x256xf32> to vector<1x8x256xf32>
    %66 = vector.broadcast %64 : vector<1x8x1xf32> to vector<1x8x256xf32>
    %67 = arith.mulf %65, %66 : vector<1x8x256xf32>
    %68 = arith.addf %61, %67 : vector<1x8x256xf32>
    %69 = vector.extract_strided_slice %53 {offsets = [0, 2, 0], sizes = [1, 1, 256], strides = [1, 1, 1]} : vector<1x8x256xf32> to vector<1x1x256xf32>
    %70 = vector.extract_strided_slice %54 {offsets = [0, 2], sizes = [8, 1], strides = [1, 1]} : vector<8x8xf32> to vector<8x1xf32>
    %71 = vector.shape_cast %70 : vector<8x1xf32> to vector<1x8x1xf32>
    %72 = vector.broadcast %69 : vector<1x1x256xf32> to vector<1x8x256xf32>
    %73 = vector.broadcast %71 : vector<1x8x1xf32> to vector<1x8x256xf32>
    %74 = arith.mulf %72, %73 : vector<1x8x256xf32>
    %75 = arith.addf %68, %74 : vector<1x8x256xf32>
    %76 = vector.extract_strided_slice %53 {offsets = [0, 3, 0], sizes = [1, 1, 256], strides = [1, 1, 1]} : vector<1x8x256xf32> to vector<1x1x256xf32>
    %77 = vector.extract_strided_slice %54 {offsets = [0, 3], sizes = [8, 1], strides = [1, 1]} : vector<8x8xf32> to vector<8x1xf32>
    %78 = vector.shape_cast %77 : vector<8x1xf32> to vector<1x8x1xf32>
    %79 = vector.broadcast %76 : vector<1x1x256xf32> to vector<1x8x256xf32>
    %80 = vector.broadcast %78 : vector<1x8x1xf32> to vector<1x8x256xf32>
    %81 = arith.mulf %79, %80 : vector<1x8x256xf32>
    %82 = arith.addf %75, %81 : vector<1x8x256xf32>
    %83 = vector.extract_strided_slice %53 {offsets = [0, 4, 0], sizes = [1, 1, 256], strides = [1, 1, 1]} : vector<1x8x256xf32> to vector<1x1x256xf32>
    %84 = vector.extract_strided_slice %54 {offsets = [0, 4], sizes = [8, 1], strides = [1, 1]} : vector<8x8xf32> to vector<8x1xf32>
    %85 = vector.shape_cast %84 : vector<8x1xf32> to vector<1x8x1xf32>
    %86 = vector.broadcast %83 : vector<1x1x256xf32> to vector<1x8x256xf32>
    %87 = vector.broadcast %85 : vector<1x8x1xf32> to vector<1x8x256xf32>
    %88 = arith.mulf %86, %87 : vector<1x8x256xf32>
    %89 = arith.addf %82, %88 : vector<1x8x256xf32>
    %90 = vector.extract_strided_slice %53 {offsets = [0, 5, 0], sizes = [1, 1, 256], strides = [1, 1, 1]} : vector<1x8x256xf32> to vector<1x1x256xf32>
    %91 = vector.extract_strided_slice %54 {offsets = [0, 5], sizes = [8, 1], strides = [1, 1]} : vector<8x8xf32> to vector<8x1xf32>
    %92 = vector.shape_cast %91 : vector<8x1xf32> to vector<1x8x1xf32>
    %93 = vector.broadcast %90 : vector<1x1x256xf32> to vector<1x8x256xf32>
    %94 = vector.broadcast %92 : vector<1x8x1xf32> to vector<1x8x256xf32>
    %95 = arith.mulf %93, %94 : vector<1x8x256xf32>
    %96 = arith.addf %89, %95 : vector<1x8x256xf32>
    %97 = vector.extract_strided_slice %53 {offsets = [0, 6, 0], sizes = [1, 1, 256], strides = [1, 1, 1]} : vector<1x8x256xf32> to vector<1x1x256xf32>
    %98 = vector.extract_strided_slice %54 {offsets = [0, 6], sizes = [8, 1], strides = [1, 1]} : vector<8x8xf32> to vector<8x1xf32>
    %99 = vector.shape_cast %98 : vector<8x1xf32> to vector<1x8x1xf32>
    %100 = vector.broadcast %97 : vector<1x1x256xf32> to vector<1x8x256xf32>
    %101 = vector.broadcast %99 : vector<1x8x1xf32> to vector<1x8x256xf32>
    %102 = arith.mulf %100, %101 : vector<1x8x256xf32>
    %103 = arith.addf %96, %102 : vector<1x8x256xf32>
    %104 = vector.extract_strided_slice %53 {offsets = [0, 7, 0], sizes = [1, 1, 256], strides = [1, 1, 1]} : vector<1x8x256xf32> to vector<1x1x256xf32>
    %105 = vector.extract_strided_slice %54 {offsets = [0, 7], sizes = [8, 1], strides = [1, 1]} : vector<8x8xf32> to vector<8x1xf32>
    %106 = vector.shape_cast %105 : vector<8x1xf32> to vector<1x8x1xf32>
    %107 = vector.broadcast %104 : vector<1x1x256xf32> to vector<1x8x256xf32>
    %108 = vector.broadcast %106 : vector<1x8x1xf32> to vector<1x8x256xf32>
    %109 = arith.mulf %107, %108 : vector<1x8x256xf32>
    %110 = arith.addf %103, %109 : vector<1x8x256xf32>
    %111 = vector.shape_cast %55 : vector<8x1xf32> to vector<1x8x1xf32>
    %112 = vector.broadcast %111 : vector<1x8x1xf32> to vector<1x8x256xf32>
    %113 = arith.addf %110, %112 : vector<1x8x256xf32>
    %cst = arith.constant 0.000000e+00 : f32
    %114 = vector.broadcast %cst : f32 to vector<1x8x256xf32>
    %115 = arith.maximumf %113, %114 : vector<1x8x256xf32>
    %116 = vector.extract_strided_slice %115 {offsets = [0, 0, 0], sizes = [1, 4, 256], strides = [1, 1, 1]} : vector<1x8x256xf32> to vector<1x4x256xf32>
    %117 = vector.extract_strided_slice %115 {offsets = [0, 4, 0], sizes = [1, 4, 256], strides = [1, 1, 1]} : vector<1x8x256xf32> to vector<1x4x256xf32>
    %118 = arith.addf %116, %117 : vector<1x4x256xf32>
    %119 = vector.extract_strided_slice %1 {offsets = [8, 0], sizes = [16, 4], strides = [1, 1]} : vector<56x128xf32> to vector<16x4xf32>
    %120 = vector.extract_strided_slice %1 {offsets = [8, 4], sizes = [16, 1], strides = [1, 1]} : vector<56x128xf32> to vector<16x1xf32>
    %121 = vector.extract_strided_slice %118 {offsets = [0, 0, 0], sizes = [1, 1, 256], strides = [1, 1, 1]} : vector<1x4x256xf32> to vector<1x1x256xf32>
    %122 = vector.extract_strided_slice %119 {offsets = [0, 0], sizes = [16, 1], strides = [1, 1]} : vector<16x4xf32> to vector<16x1xf32>
    %123 = vector.shape_cast %122 : vector<16x1xf32> to vector<1x16x1xf32>
    %124 = vector.broadcast %121 : vector<1x1x256xf32> to vector<1x16x256xf32>
    %125 = vector.broadcast %123 : vector<1x16x1xf32> to vector<1x16x256xf32>
    %126 = arith.mulf %124, %125 : vector<1x16x256xf32>
    %127 = vector.extract_strided_slice %118 {offsets = [0, 1, 0], sizes = [1, 1, 256], strides = [1, 1, 1]} : vector<1x4x256xf32> to vector<1x1x256xf32>
    %128 = vector.extract_strided_slice %119 {offsets = [0, 1], sizes = [16, 1], strides = [1, 1]} : vector<16x4xf32> to vector<16x1xf32>
    %129 = vector.shape_cast %128 : vector<16x1xf32> to vector<1x16x1xf32>
    %130 = vector.broadcast %127 : vector<1x1x256xf32> to vector<1x16x256xf32>
    %131 = vector.broadcast %129 : vector<1x16x1xf32> to vector<1x16x256xf32>
    %132 = arith.mulf %130, %131 : vector<1x16x256xf32>
    %133 = arith.addf %126, %132 : vector<1x16x256xf32>
    %134 = vector.extract_strided_slice %118 {offsets = [0, 2, 0], sizes = [1, 1, 256], strides = [1, 1, 1]} : vector<1x4x256xf32> to vector<1x1x256xf32>
    %135 = vector.extract_strided_slice %119 {offsets = [0, 2], sizes = [16, 1], strides = [1, 1]} : vector<16x4xf32> to vector<16x1xf32>
    %136 = vector.shape_cast %135 : vector<16x1xf32> to vector<1x16x1xf32>
    %137 = vector.broadcast %134 : vector<1x1x256xf32> to vector<1x16x256xf32>
    %138 = vector.broadcast %136 : vector<1x16x1xf32> to vector<1x16x256xf32>
    %139 = arith.mulf %137, %138 : vector<1x16x256xf32>
    %140 = arith.addf %133, %139 : vector<1x16x256xf32>
    %141 = vector.extract_strided_slice %118 {offsets = [0, 3, 0], sizes = [1, 1, 256], strides = [1, 1, 1]} : vector<1x4x256xf32> to vector<1x1x256xf32>
    %142 = vector.extract_strided_slice %119 {offsets = [0, 3], sizes = [16, 1], strides = [1, 1]} : vector<16x4xf32> to vector<16x1xf32>
    %143 = vector.shape_cast %142 : vector<16x1xf32> to vector<1x16x1xf32>
    %144 = vector.broadcast %141 : vector<1x1x256xf32> to vector<1x16x256xf32>
    %145 = vector.broadcast %143 : vector<1x16x1xf32> to vector<1x16x256xf32>
    %146 = arith.mulf %144, %145 : vector<1x16x256xf32>
    %147 = arith.addf %140, %146 : vector<1x16x256xf32>
    %148 = vector.shape_cast %120 : vector<16x1xf32> to vector<1x16x1xf32>
    %149 = vector.broadcast %148 : vector<1x16x1xf32> to vector<1x16x256xf32>
    %150 = arith.addf %147, %149 : vector<1x16x256xf32>
    %cst_23 = arith.constant 0.000000e+00 : f32
    %151 = vector.broadcast %cst_23 : f32 to vector<1x16x256xf32>
    %152 = arith.maximumf %150, %151 : vector<1x16x256xf32>
    %153 = vector.extract_strided_slice %1 {offsets = [24, 0], sizes = [16, 2], strides = [1, 1]} : vector<56x128xf32> to vector<16x2xf32>
    %154 = vector.extract_strided_slice %153 {offsets = [0, 0], sizes = [16, 1], strides = [1, 1]} : vector<16x2xf32> to vector<16x1xf32>
    %155 = vector.shape_cast %154 : vector<16x1xf32> to vector<1x16x1xf32>
    %156 = vector.broadcast %155 : vector<1x16x1xf32> to vector<1x16x256xf32>
    %157 = arith.mulf %152, %156 : vector<1x16x256xf32>
    %cst_24 = arith.constant dense<0.000000e+00> : vector<1x256xf32>
    %158 = vector.multi_reduction <add>, %157, %cst_24 [1] : vector<1x16x256xf32> to vector<1x256xf32>
    %159 = vector.shape_cast %158 : vector<1x256xf32> to vector<1x1x256xf32>
    %160 = vector.extract_strided_slice %153 {offsets = [0, 1], sizes = [16, 1], strides = [1, 1]} : vector<16x2xf32> to vector<16x1xf32>
    %161 = vector.shape_cast %160 : vector<16x1xf32> to vector<1x16x1xf32>
    %162 = vector.broadcast %161 : vector<1x16x1xf32> to vector<1x16x256xf32>
    %163 = arith.mulf %152, %162 : vector<1x16x256xf32>
    %cst_25 = arith.constant dense<0.000000e+00> : vector<1x256xf32>
    %164 = vector.multi_reduction <add>, %163, %cst_25 [1] : vector<1x16x256xf32> to vector<1x256xf32>
    %165 = vector.shape_cast %164 : vector<1x256xf32> to vector<1x1x256xf32>
    %166 = arith.maximumf %159, %165 : vector<1x1x256xf32>
    %167 = arith.subf %159, %166 : vector<1x1x256xf32>
    %168 = math.exp %167 : vector<1x1x256xf32>
    %169 = arith.subf %165, %166 : vector<1x1x256xf32>
    %170 = math.exp %169 : vector<1x1x256xf32>
    %171 = arith.addf %168, %170 : vector<1x1x256xf32>
    %172 = tpu.reciprocal %171 : vector<1x1x256xf32> -> vector<1x1x256xf32>
    %173 = arith.mulf %168, %172 : vector<1x1x256xf32>
    %174 = arith.mulf %170, %172 : vector<1x1x256xf32>
    %175 = vector.broadcast %173 : vector<1x1x256xf32> to vector<1x4x256xf32>
    %176 = arith.mulf %116, %175 : vector<1x4x256xf32>
    %177 = vector.broadcast %174 : vector<1x1x256xf32> to vector<1x4x256xf32>
    %178 = arith.mulf %117, %177 : vector<1x4x256xf32>
    %179 = arith.addf %176, %178 : vector<1x4x256xf32>
    %180 = vector.extract_strided_slice %1 {offsets = [40, 0], sizes = [8, 4], strides = [1, 1]} : vector<56x128xf32> to vector<8x4xf32>
    %181 = vector.extract_strided_slice %1 {offsets = [48, 0], sizes = [4, 8], strides = [1, 1]} : vector<56x128xf32> to vector<4x8xf32>
    %cst_26 = arith.constant dense<0.000000e+00> : vector<1x4xf32>
    %182 = vector.multi_reduction <add>, %179, %cst_26 [2] : vector<1x4x256xf32> to vector<1x4xf32>
    %183 = vector.shape_cast %182 : vector<1x4xf32> to vector<1x4x1xf32>
    %cst_27 = arith.constant 3.906250e-03 : f32
    %184 = vector.broadcast %cst_27 : f32 to vector<1x4x1xf32>
    %185 = arith.mulf %183, %184 : vector<1x4x1xf32>
    %186 = vector.extract_strided_slice %185 {offsets = [0, 0, 0], sizes = [1, 1, 1], strides = [1, 1, 1]} : vector<1x4x1xf32> to vector<1x1x1xf32>
    %187 = vector.extract_strided_slice %180 {offsets = [0, 0], sizes = [8, 1], strides = [1, 1]} : vector<8x4xf32> to vector<8x1xf32>
    %188 = vector.shape_cast %187 : vector<8x1xf32> to vector<1x8x1xf32>
    %189 = vector.broadcast %186 : vector<1x1x1xf32> to vector<1x8x1xf32>
    %190 = arith.mulf %189, %188 : vector<1x8x1xf32>
    %191 = vector.extract_strided_slice %185 {offsets = [0, 1, 0], sizes = [1, 1, 1], strides = [1, 1, 1]} : vector<1x4x1xf32> to vector<1x1x1xf32>
    %192 = vector.extract_strided_slice %180 {offsets = [0, 1], sizes = [8, 1], strides = [1, 1]} : vector<8x4xf32> to vector<8x1xf32>
    %193 = vector.shape_cast %192 : vector<8x1xf32> to vector<1x8x1xf32>
    %194 = vector.broadcast %191 : vector<1x1x1xf32> to vector<1x8x1xf32>
    %195 = arith.mulf %194, %193 : vector<1x8x1xf32>
    %196 = arith.addf %190, %195 : vector<1x8x1xf32>
    %197 = vector.extract_strided_slice %185 {offsets = [0, 2, 0], sizes = [1, 1, 1], strides = [1, 1, 1]} : vector<1x4x1xf32> to vector<1x1x1xf32>
    %198 = vector.extract_strided_slice %180 {offsets = [0, 2], sizes = [8, 1], strides = [1, 1]} : vector<8x4xf32> to vector<8x1xf32>
    %199 = vector.shape_cast %198 : vector<8x1xf32> to vector<1x8x1xf32>
    %200 = vector.broadcast %197 : vector<1x1x1xf32> to vector<1x8x1xf32>
    %201 = arith.mulf %200, %199 : vector<1x8x1xf32>
    %202 = arith.addf %196, %201 : vector<1x8x1xf32>
    %203 = vector.extract_strided_slice %185 {offsets = [0, 3, 0], sizes = [1, 1, 1], strides = [1, 1, 1]} : vector<1x4x1xf32> to vector<1x1x1xf32>
    %204 = vector.extract_strided_slice %180 {offsets = [0, 3], sizes = [8, 1], strides = [1, 1]} : vector<8x4xf32> to vector<8x1xf32>
    %205 = vector.shape_cast %204 : vector<8x1xf32> to vector<1x8x1xf32>
    %206 = vector.broadcast %203 : vector<1x1x1xf32> to vector<1x8x1xf32>
    %207 = arith.mulf %206, %205 : vector<1x8x1xf32>
    %208 = arith.addf %202, %207 : vector<1x8x1xf32>
    %cst_28 = arith.constant 0.000000e+00 : f32
    %209 = vector.broadcast %cst_28 : f32 to vector<1x8x1xf32>
    %210 = arith.maximumf %208, %209 : vector<1x8x1xf32>
    %211 = vector.extract_strided_slice %210 {offsets = [0, 0, 0], sizes = [1, 1, 1], strides = [1, 1, 1]} : vector<1x8x1xf32> to vector<1x1x1xf32>
    %212 = vector.extract_strided_slice %181 {offsets = [0, 0], sizes = [4, 1], strides = [1, 1]} : vector<4x8xf32> to vector<4x1xf32>
    %213 = vector.shape_cast %212 : vector<4x1xf32> to vector<1x4x1xf32>
    %214 = vector.broadcast %211 : vector<1x1x1xf32> to vector<1x4x1xf32>
    %215 = arith.mulf %214, %213 : vector<1x4x1xf32>
    %216 = vector.extract_strided_slice %210 {offsets = [0, 1, 0], sizes = [1, 1, 1], strides = [1, 1, 1]} : vector<1x8x1xf32> to vector<1x1x1xf32>
    %217 = vector.extract_strided_slice %181 {offsets = [0, 1], sizes = [4, 1], strides = [1, 1]} : vector<4x8xf32> to vector<4x1xf32>
    %218 = vector.shape_cast %217 : vector<4x1xf32> to vector<1x4x1xf32>
    %219 = vector.broadcast %216 : vector<1x1x1xf32> to vector<1x4x1xf32>
    %220 = arith.mulf %219, %218 : vector<1x4x1xf32>
    %221 = arith.addf %215, %220 : vector<1x4x1xf32>
    %222 = vector.extract_strided_slice %210 {offsets = [0, 2, 0], sizes = [1, 1, 1], strides = [1, 1, 1]} : vector<1x8x1xf32> to vector<1x1x1xf32>
    %223 = vector.extract_strided_slice %181 {offsets = [0, 2], sizes = [4, 1], strides = [1, 1]} : vector<4x8xf32> to vector<4x1xf32>
    %224 = vector.shape_cast %223 : vector<4x1xf32> to vector<1x4x1xf32>
    %225 = vector.broadcast %222 : vector<1x1x1xf32> to vector<1x4x1xf32>
    %226 = arith.mulf %225, %224 : vector<1x4x1xf32>
    %227 = arith.addf %221, %226 : vector<1x4x1xf32>
    %228 = vector.extract_strided_slice %210 {offsets = [0, 3, 0], sizes = [1, 1, 1], strides = [1, 1, 1]} : vector<1x8x1xf32> to vector<1x1x1xf32>
    %229 = vector.extract_strided_slice %181 {offsets = [0, 3], sizes = [4, 1], strides = [1, 1]} : vector<4x8xf32> to vector<4x1xf32>
    %230 = vector.shape_cast %229 : vector<4x1xf32> to vector<1x4x1xf32>
    %231 = vector.broadcast %228 : vector<1x1x1xf32> to vector<1x4x1xf32>
    %232 = arith.mulf %231, %230 : vector<1x4x1xf32>
    %233 = arith.addf %227, %232 : vector<1x4x1xf32>
    %234 = vector.extract_strided_slice %210 {offsets = [0, 4, 0], sizes = [1, 1, 1], strides = [1, 1, 1]} : vector<1x8x1xf32> to vector<1x1x1xf32>
    %235 = vector.extract_strided_slice %181 {offsets = [0, 4], sizes = [4, 1], strides = [1, 1]} : vector<4x8xf32> to vector<4x1xf32>
    %236 = vector.shape_cast %235 : vector<4x1xf32> to vector<1x4x1xf32>
    %237 = vector.broadcast %234 : vector<1x1x1xf32> to vector<1x4x1xf32>
    %238 = arith.mulf %237, %236 : vector<1x4x1xf32>
    %239 = arith.addf %233, %238 : vector<1x4x1xf32>
    %240 = vector.extract_strided_slice %210 {offsets = [0, 5, 0], sizes = [1, 1, 1], strides = [1, 1, 1]} : vector<1x8x1xf32> to vector<1x1x1xf32>
    %241 = vector.extract_strided_slice %181 {offsets = [0, 5], sizes = [4, 1], strides = [1, 1]} : vector<4x8xf32> to vector<4x1xf32>
    %242 = vector.shape_cast %241 : vector<4x1xf32> to vector<1x4x1xf32>
    %243 = vector.broadcast %240 : vector<1x1x1xf32> to vector<1x4x1xf32>
    %244 = arith.mulf %243, %242 : vector<1x4x1xf32>
    %245 = arith.addf %239, %244 : vector<1x4x1xf32>
    %246 = vector.extract_strided_slice %210 {offsets = [0, 6, 0], sizes = [1, 1, 1], strides = [1, 1, 1]} : vector<1x8x1xf32> to vector<1x1x1xf32>
    %247 = vector.extract_strided_slice %181 {offsets = [0, 6], sizes = [4, 1], strides = [1, 1]} : vector<4x8xf32> to vector<4x1xf32>
    %248 = vector.shape_cast %247 : vector<4x1xf32> to vector<1x4x1xf32>
    %249 = vector.broadcast %246 : vector<1x1x1xf32> to vector<1x4x1xf32>
    %250 = arith.mulf %249, %248 : vector<1x4x1xf32>
    %251 = arith.addf %245, %250 : vector<1x4x1xf32>
    %252 = vector.extract_strided_slice %210 {offsets = [0, 7, 0], sizes = [1, 1, 1], strides = [1, 1, 1]} : vector<1x8x1xf32> to vector<1x1x1xf32>
    %253 = vector.extract_strided_slice %181 {offsets = [0, 7], sizes = [4, 1], strides = [1, 1]} : vector<4x8xf32> to vector<4x1xf32>
    %254 = vector.shape_cast %253 : vector<4x1xf32> to vector<1x4x1xf32>
    %255 = vector.broadcast %252 : vector<1x1x1xf32> to vector<1x4x1xf32>
    %256 = arith.mulf %255, %254 : vector<1x4x1xf32>
    %257 = arith.addf %251, %256 : vector<1x4x1xf32>
    %258 = arith.negf %257 : vector<1x4x1xf32>
    %259 = math.exp %258 : vector<1x4x1xf32>
    %cst_29 = arith.constant 1.000000e+00 : f32
    %260 = vector.broadcast %cst_29 : f32 to vector<1x4x1xf32>
    %261 = arith.addf %260, %259 : vector<1x4x1xf32>
    %262 = arith.divf %260, %261 : vector<1x4x1xf32>
    %263 = vector.broadcast %262 : vector<1x4x1xf32> to vector<1x4x256xf32>
    %264 = arith.mulf %179, %263 : vector<1x4x256xf32>
    %265 = tpu.iota {dimensions = array<i32: 1>} : vector<1x2x1xi32>
    %cst_30 = arith.constant dense<0.000000e+00> : vector<1x256xf32>
    %266 = vector.multi_reduction <add>, %264, %cst_30 [1] : vector<1x4x256xf32> to vector<1x256xf32>
    %267 = vector.shape_cast %266 : vector<1x256xf32> to vector<1x1x256xf32>
    %cst_31 = arith.constant 4.000000e+00 : f32
    %268 = vector.broadcast %cst_31 : f32 to vector<1x1x256xf32>
    %269 = arith.divf %267, %268 : vector<1x1x256xf32>
    %cst_32 = arith.constant dense<0xFF800000> : vector<1x256xf32>
    %270 = vector.multi_reduction <maximumf>, %264, %cst_32 [1] : vector<1x4x256xf32> to vector<1x256xf32>
    %271 = vector.shape_cast %270 : vector<1x256xf32> to vector<1x1x256xf32>
    %c0_i32 = arith.constant 0 : i32
    %272 = vector.broadcast %c0_i32 : i32 to vector<1x2x1xi32>
    %273 = arith.cmpi eq, %265, %272 : vector<1x2x1xi32>
    %274 = vector.shape_cast %273 : vector<1x2x1xi1> to vector<1x2x1xi1>
    %275 = vector.broadcast %274 : vector<1x2x1xi1> to vector<1x2x256xi1>
    %276 = vector.shape_cast %269 : vector<1x1x256xf32> to vector<1x1x256xf32>
    %277 = vector.broadcast %276 : vector<1x1x256xf32> to vector<1x2x256xf32>
    %278 = vector.shape_cast %271 : vector<1x1x256xf32> to vector<1x1x256xf32>
    %279 = vector.broadcast %278 : vector<1x1x256xf32> to vector<1x2x256xf32>
    %280 = arith.select %275, %277, %279 : vector<1x2x256xi1>, vector<1x2x256xf32>
    %c4_33 = arith.constant 4 : index
    %c0_34 = arith.constant 0 : index
    %c0_35 = arith.constant 0 : index
    %281 = vector.load %arg3[%c4_33, %c0_34, %c0_35] : memref<9x2x256xf32, #tpu.memory_space<vmem>>, vector<1x2x256xf32>
    %282 = vector.shape_cast %281 : vector<1x2x256xf32> to vector<2x256xf32>
    %283 = vector.shape_cast %282 : vector<2x256xf32> to vector<1x2x256xf32>
    %284 = arith.mulf %280, %283 : vector<1x2x256xf32>
    %c17_i32_36 = arith.constant 17 : i32
    %285 = tpu.dynamic_rotate %280 by %c17_i32_36 dim 2 : vector<1x2x256xf32>, i32 -> vector<1x2x256xf32>
    %c0_37 = arith.constant 0 : index
    %c0_38 = arith.constant 0 : index
    %c0_39 = arith.constant 0 : index
    %286 = vector.load %arg3[%c0_37, %c0_38, %c0_39] : memref<9x2x256xf32, #tpu.memory_space<vmem>>, vector<1x2x256xf32>
    %287 = vector.shape_cast %286 : vector<1x2x256xf32> to vector<2x256xf32>
    %288 = vector.shape_cast %287 : vector<2x256xf32> to vector<1x2x256xf32>
    %289 = arith.mulf %285, %288 : vector<1x2x256xf32>
    %290 = arith.addf %284, %289 : vector<1x2x256xf32>
    %c16_i32_40 = arith.constant 16 : i32
    %291 = tpu.dynamic_rotate %280 by %c16_i32_40 dim 2 : vector<1x2x256xf32>, i32 -> vector<1x2x256xf32>
    %c1_41 = arith.constant 1 : index
    %c0_42 = arith.constant 0 : index
    %c0_43 = arith.constant 0 : index
    %292 = vector.load %arg3[%c1_41, %c0_42, %c0_43] : memref<9x2x256xf32, #tpu.memory_space<vmem>>, vector<1x2x256xf32>
    %293 = vector.shape_cast %292 : vector<1x2x256xf32> to vector<2x256xf32>
    %294 = vector.shape_cast %293 : vector<2x256xf32> to vector<1x2x256xf32>
    %295 = arith.mulf %291, %294 : vector<1x2x256xf32>
    %296 = arith.addf %290, %295 : vector<1x2x256xf32>
    %c15_i32_44 = arith.constant 15 : i32
    %297 = tpu.dynamic_rotate %280 by %c15_i32_44 dim 2 : vector<1x2x256xf32>, i32 -> vector<1x2x256xf32>
    %c2_45 = arith.constant 2 : index
    %c0_46 = arith.constant 0 : index
    %c0_47 = arith.constant 0 : index
    %298 = vector.load %arg3[%c2_45, %c0_46, %c0_47] : memref<9x2x256xf32, #tpu.memory_space<vmem>>, vector<1x2x256xf32>
    %299 = vector.shape_cast %298 : vector<1x2x256xf32> to vector<2x256xf32>
    %300 = vector.shape_cast %299 : vector<2x256xf32> to vector<1x2x256xf32>
    %301 = arith.mulf %297, %300 : vector<1x2x256xf32>
    %302 = arith.addf %296, %301 : vector<1x2x256xf32>
    %c1_i32_48 = arith.constant 1 : i32
    %303 = tpu.dynamic_rotate %280 by %c1_i32_48 dim 2 : vector<1x2x256xf32>, i32 -> vector<1x2x256xf32>
    %c3_49 = arith.constant 3 : index
    %c0_50 = arith.constant 0 : index
    %c0_51 = arith.constant 0 : index
    %304 = vector.load %arg3[%c3_49, %c0_50, %c0_51] : memref<9x2x256xf32, #tpu.memory_space<vmem>>, vector<1x2x256xf32>
    %305 = vector.shape_cast %304 : vector<1x2x256xf32> to vector<2x256xf32>
    %306 = vector.shape_cast %305 : vector<2x256xf32> to vector<1x2x256xf32>
    %307 = arith.mulf %303, %306 : vector<1x2x256xf32>
    %308 = arith.addf %302, %307 : vector<1x2x256xf32>
    %c255_i32_52 = arith.constant 255 : i32
    %309 = tpu.dynamic_rotate %280 by %c255_i32_52 dim 2 : vector<1x2x256xf32>, i32 -> vector<1x2x256xf32>
    %c5_53 = arith.constant 5 : index
    %c0_54 = arith.constant 0 : index
    %c0_55 = arith.constant 0 : index
    %310 = vector.load %arg3[%c5_53, %c0_54, %c0_55] : memref<9x2x256xf32, #tpu.memory_space<vmem>>, vector<1x2x256xf32>
    %311 = vector.shape_cast %310 : vector<1x2x256xf32> to vector<2x256xf32>
    %312 = vector.shape_cast %311 : vector<2x256xf32> to vector<1x2x256xf32>
    %313 = arith.mulf %309, %312 : vector<1x2x256xf32>
    %314 = arith.addf %308, %313 : vector<1x2x256xf32>
    %c241_i32_56 = arith.constant 241 : i32
    %315 = tpu.dynamic_rotate %280 by %c241_i32_56 dim 2 : vector<1x2x256xf32>, i32 -> vector<1x2x256xf32>
    %c6_57 = arith.constant 6 : index
    %c0_58 = arith.constant 0 : index
    %c0_59 = arith.constant 0 : index
    %316 = vector.load %arg3[%c6_57, %c0_58, %c0_59] : memref<9x2x256xf32, #tpu.memory_space<vmem>>, vector<1x2x256xf32>
    %317 = vector.shape_cast %316 : vector<1x2x256xf32> to vector<2x256xf32>
    %318 = vector.shape_cast %317 : vector<2x256xf32> to vector<1x2x256xf32>
    %319 = arith.mulf %315, %318 : vector<1x2x256xf32>
    %320 = arith.addf %314, %319 : vector<1x2x256xf32>
    %c240_i32_60 = arith.constant 240 : i32
    %321 = tpu.dynamic_rotate %280 by %c240_i32_60 dim 2 : vector<1x2x256xf32>, i32 -> vector<1x2x256xf32>
    %c7_61 = arith.constant 7 : index
    %c0_62 = arith.constant 0 : index
    %c0_63 = arith.constant 0 : index
    %322 = vector.load %arg3[%c7_61, %c0_62, %c0_63] : memref<9x2x256xf32, #tpu.memory_space<vmem>>, vector<1x2x256xf32>
    %323 = vector.shape_cast %322 : vector<1x2x256xf32> to vector<2x256xf32>
    %324 = vector.shape_cast %323 : vector<2x256xf32> to vector<1x2x256xf32>
    %325 = arith.mulf %321, %324 : vector<1x2x256xf32>
    %326 = arith.addf %320, %325 : vector<1x2x256xf32>
    %c239_i32_64 = arith.constant 239 : i32
    %327 = tpu.dynamic_rotate %280 by %c239_i32_64 dim 2 : vector<1x2x256xf32>, i32 -> vector<1x2x256xf32>
    %c8_65 = arith.constant 8 : index
    %c0_66 = arith.constant 0 : index
    %c0_67 = arith.constant 0 : index
    %328 = vector.load %arg3[%c8_65, %c0_66, %c0_67] : memref<9x2x256xf32, #tpu.memory_space<vmem>>, vector<1x2x256xf32>
    %329 = vector.shape_cast %328 : vector<1x2x256xf32> to vector<2x256xf32>
    %330 = vector.shape_cast %329 : vector<2x256xf32> to vector<1x2x256xf32>
    %331 = arith.mulf %327, %330 : vector<1x2x256xf32>
    %332 = arith.addf %326, %331 : vector<1x2x256xf32>
    %cst_68 = arith.constant dense<0.000000e+00> : vector<1x256xf32>
    %333 = vector.multi_reduction <add>, %332, %cst_68 [1] : vector<1x2x256xf32> to vector<1x256xf32>
    %334 = vector.shape_cast %333 : vector<1x256xf32> to vector<1x1x256xf32>
    %335 = arith.negf %334 : vector<1x1x256xf32>
    %336 = math.exp %335 : vector<1x1x256xf32>
    %cst_69 = arith.constant 1.000000e+00 : f32
    %337 = vector.broadcast %cst_69 : f32 to vector<1x1x256xf32>
    %338 = arith.addf %337, %336 : vector<1x1x256xf32>
    %339 = arith.divf %337, %338 : vector<1x1x256xf32>
    %340 = vector.broadcast %339 : vector<1x1x256xf32> to vector<1x4x256xf32>
    %341 = arith.mulf %264, %340 : vector<1x4x256xf32>
    %c0_70 = arith.constant 0 : index
    %c0_71 = arith.constant 0 : index
    %c0_72 = arith.constant 0 : index
    %342 = vector.load %arg5[%c0_70, %c0_71, %c0_72] : memref<1x4x256xf32, #tpu.memory_space<vmem>>, vector<1x4x256xf32>
    tpu.vector_store %arg5[%c0_70, %c0_71, %c0_72], %341 {strides = array<i32>} : memref<1x4x256xf32, #tpu.memory_space<vmem>>, vector<1x4x256xf32>,
    %c0_i32_73 = arith.constant 0 : i32
    %343 = vector.broadcast %c0_i32_73 : i32 to vector<1x2x1xi32>
    %344 = arith.cmpi eq, %265, %343 : vector<1x2x1xi32>
    %345 = vector.shape_cast %344 : vector<1x2x1xi1> to vector<1x2x1xi1>
    %346 = vector.broadcast %345 : vector<1x2x1xi1> to vector<1x2x256xi1>
    %347 = vector.shape_cast %173 : vector<1x1x256xf32> to vector<1x1x256xf32>
    %348 = vector.broadcast %347 : vector<1x1x256xf32> to vector<1x2x256xf32>
    %349 = vector.shape_cast %174 : vector<1x1x256xf32> to vector<1x1x256xf32>
    %350 = vector.broadcast %349 : vector<1x1x256xf32> to vector<1x2x256xf32>
    %351 = arith.select %346, %348, %350 : vector<1x2x256xi1>, vector<1x2x256xf32>
    %c0_74 = arith.constant 0 : index
    %c0_75 = arith.constant 0 : index
    %c0_76 = arith.constant 0 : index
    %352 = vector.load %arg6[%c0_74, %c0_75, %c0_76] : memref<1x2x256xf32, #tpu.memory_space<vmem>>, vector<1x2x256xf32>
    tpu.vector_store %arg6[%c0_74, %c0_75, %c0_76], %351 {strides = array<i32>} : memref<1x2x256xf32, #tpu.memory_space<vmem>>, vector<1x2x256xf32>,
    return
  }
  func.func @transform_0(%arg0: i32) -> (i32, i32, i32) {
    %c0_i32 = arith.constant 0 : i32
    %c0_i32_0 = arith.constant 0 : i32
    %c0_i32_1 = arith.constant 0 : i32
    return %arg0, %c0_i32, %c0_i32_0 : i32, i32, i32
  }
  func.func @transform_1(%arg0: i32) -> (i32, i32, i32) {
    %c0_i32 = arith.constant 0 : i32
    %c0_i32_0 = arith.constant 0 : i32
    %c0_i32_1 = arith.constant 0 : i32
    %c0_i32_2 = arith.constant 0 : i32
    return %c0_i32, %c0_i32_0, %c0_i32_1 : i32, i32, i32
  }
  func.func @transform_2(%arg0: i32) -> (i32, i32, i32) {
    %c0_i32 = arith.constant 0 : i32
    %c0_i32_0 = arith.constant 0 : i32
    %c0_i32_1 = arith.constant 0 : i32
    %c0_i32_2 = arith.constant 0 : i32
    return %c0_i32, %c0_i32_0, %c0_i32_1 : i32, i32, i32
  }
  func.func @transform_3(%arg0: i32) -> (i32, i32) {
    %c0_i32 = arith.constant 0 : i32
    %c0_i32_0 = arith.constant 0 : i32
    %c0_i32_1 = arith.constant 0 : i32
    return %c0_i32, %c0_i32_0 : i32, i32
  }
  func.func @transform_4(%arg0: i32) -> (i32, i32, i32) {
    %c0_i32 = arith.constant 0 : i32
    %c0_i32_0 = arith.constant 0 : i32
    %c0_i32_1 = arith.constant 0 : i32
    return %arg0, %c0_i32, %c0_i32_0 : i32, i32, i32
  }
  func.func @transform_5(%arg0: i32) -> (i32, i32, i32) {
    %c0_i32 = arith.constant 0 : i32
    %c0_i32_0 = arith.constant 0 : i32
    %c0_i32_1 = arith.constant 0 : i32
    return %arg0, %c0_i32, %c0_i32_0 : i32, i32, i32
  }
}

</mosaic_0001>

<bundles_post_ra>
// kernel: tpu_custom_call.1
= control target key start
LH: loop header
LB: loop body
LE: loop exit
PB: predicated region body
PF: predicated region fallthrough
CT: control target
= control target key end

     0   :  { %11 = vsyncpa [#allocation3], 0  ;;  %s2404_s0 = inlined_call_operand.hbm [shape: f32[2,8,256], index: 0, kind: input, shape index: {}]   ;;  %s2405_s1 = inlined_call_operand.hbm [shape: f32[9,8,256], index: 1, kind: input, shape index: {}]   ;;  %s2406_s2 = inlined_call_operand.hbm [shape: f32[9,2,256], index: 2, kind: input, shape index: {}]   ;;  %s2407_s3 = inlined_call_operand.hbm [shape: f32[56,128], index: 3, kind: input, shape index: {}]   ;;  %s2408_s4 = inlined_call_operand.hbm [shape: f32[2,4,256], index: 4, kind: output, shape index: {0}]   ;;  %s2409_s5 = inlined_call_operand.hbm [shape: f32[2,2,256], index: 5, kind: output, shape index: {1}]  }
   0x1   :  { %13 = vsyncpa [#allocation3 + $0x1], 0 }
   0x2   :  { %14 = vsyncpa [#allocation6], 0 }
   0x3   :  { %15 = vsyncpa [#allocation9], 0 }
   0x4   :  { %16 = vsyncpa [#allocation4], 0 }
   0x5   :  { %18 = vsyncpa [#allocation4 + $0x1], 0 }
   0x6   :  { %19 = vsyncpa [#allocation12], 0 }
   0x7   :  { %21 = vsyncpa [#allocation12 + $0x1], 0  ;;  %s1822_s18 = smov 0   ;;  %s1824_s19 = smov 0  }
   0x8   :  { %s1826_s20 = smov 0   ;;  %s1828_s21 = smov 0  }
   0x9 LB: > { %s1843_s22 = sadd.s32 4294967295, %s1755_s21   ;;  %s1338_s23 = sadd.s32 4294967294, %s1755_s21   ;;  %s1755_s21 = sphi %s1828_s21, %s2432_s21   ;;  %s1751_s20 = sphi %s1826_s20, %s2431_s20   ;;  %s1747_s19 = sphi %s1824_s19, %s2430_s19   ;;  %s1743_s18 = sphi %s1822_s18, %s2429_s18  }
   0xa   : > { %p47_p0 = scmp.ne.s32.totalorder %s1747_s19, %s1743_s18  ;;  %p2410_p1 = scmp.eq.s32.totalorder %s1843_s22, 0 }
   0xb   : > { %p140_p3 = scmp.eq.s32.totalorder %s1338_s23, 1  ;;  %p1339_p5 = scmp.ge.s32.totalorder %s1755_s21, 1 }
   0xc   : > { %p1852_p4 = por %p2410_p1, %p47_p0  ;;  %p173_p7 = scmp.lt.s32.totalorder %s1755_s21, 3 }
   0xd   : > { %p1857_p6 = por %p140_p3, %p47_p0  ;;  %s1757_s27 = smov [#allocation5]  }
   0xe   : > { %s2413_s24 = scalar_select %p1852_p4, 1, 0 }
   0xf   : > { %s2414_s25 = scalar_select %p1857_p6, 1, 0 }
  0x10   : > { %p1862_p8 = pnand %p1339_p5, %p173_p7  ;;  %s185_s28 = sshll.u32 %s1757_s27, 4  ;;  %s1866_s28 = int_to_ptr.vmem [resolvable:$true] %s185_s28 }
  0x11   : > { %s1758_s30 = smov [#allocation7]   ;;  %s1535_s9 = scalar_lea.hbm %s2405_s1, 2304 }
  0x12   : > { %s2415_s26 = scalar_select %p1862_p8, 1, 0 }
  0x13   : > { %p1396_p9 = pneg %p1862_p8  ;;  %s198_s6 = sshll.u32 %s1758_s30, 4  ;;  %s1877_s6 = int_to_ptr.vmem [resolvable:$true] %s198_s6 }
  0x14   : > { %p1536_p12 = scmp.ne.s32.totalorder %s2405_s1, %s1535_s9  ;;  %p1542_p5 = scmp.lt.u32.totalorder %s1535_s9, %s2405_s1 }
  0x15   : > { %p1873_p11 = pnand %p1396_p9, %p2410_p1 }
  0x17   : > { %p1887_p13 = pneg %p1873_p11 }
  0x19   : > { %p1538_p0 = pnand %p1887_p13, %p1536_p12 }
  0x1b   : > { %p1539_p3 = pneg %p1538_p0 }
  0x1d   : > { %p1544_p7 = pnand %p1542_p5, %p1539_p3 }
  0x1f   : > { %1547 = shalt.err (!%p1544_p7)
}
  0x20   : > { %s1548_s15 = scalar_lea.vmem %s1866_s28, 2304  ;;  %p1556_p2 = scmp.lt.s32.totalorder %s1866_s28, %s1866_s28 }
  0x21   : > { %p1549_p9 = scmp.ne.s32.totalorder %s1866_s28, %s1548_s15  ;;  %p1557_p6 = scmp.lt.s32.totalorder %s1548_s15, %s1548_s15 }
  0x23   : > { %p1551_p10 = pnand %p1549_p9, %p1887_p13  ;;  %p1558_p12 = por %p1557_p6, %p1556_p2 }
  0x25   : > { %p1552_p1 = pneg %p1551_p10 }
  0x27   : > { %p1559_p0 = pnand %p1558_p12, %p1552_p1 }
  0x29   : > { %1562 = shalt.err (!%p1559_p0)
}
  0x2a   : > { %s1759_s16 = smov 256   ;;  %s1760_s17 = smov 16  }
  0x2b   : > { %1399 = dma.hbm_to_vmem [thread:$0]  (!%p1873_p11), %s2405_s1, 2304, %s1866_s28, [#allocation6], %s1759_s16, %s1759_s16, %s1760_s17  }
  0x2c   : > { %s1563_s8 = scalar_lea.hbm %s2406_s2, 576 }
  0x2d   : > { %p1564_p2 = scmp.ne.s32.totalorder %s2406_s2, %s1563_s8  ;;  %p1570_p10 = scmp.lt.u32.totalorder %s1563_s8, %s2406_s2 }
  0x2f   : > { %p1566_p1 = pnand %p1564_p2, %p1887_p13 }
  0x31   : > { %p1567_p6 = pneg %p1566_p1 }
  0x33   : > { %p1572_p3 = pnand %p1570_p10, %p1567_p6 }
  0x35   : > { %1575 = shalt.err (!%p1572_p3)
}
  0x36   : > { %s1576_s28 = scalar_lea.vmem %s1877_s6, 576  ;;  %p1584_p12 = scmp.lt.s32.totalorder %s1877_s6, %s1877_s6 }
  0x37   : > { %p1577_p5 = scmp.ne.s32.totalorder %s1877_s6, %s1576_s28  ;;  %p1585_p0 = scmp.lt.s32.totalorder %s1576_s28, %s1576_s28 }
  0x39   : > { %p1579_p7 = pnand %p1577_p5, %p1887_p13  ;;  %p1586_p2 = por %p1585_p0, %p1584_p12 }
  0x3b   : > { %p1580_p9 = pneg %p1579_p7 }
  0x3d   : > { %p1587_p1 = pnand %p1586_p2, %p1580_p9 }
  0x3f   : > { %1590 = shalt.err (!%p1587_p1)
}
  0x40   : > { %s1761_s14 = smov 64   ;;  %s1762_s15 = smov 4  }
  0x41   : > { %1402 = dma.hbm_to_vmem [thread:$0]  (!%p1873_p11), %s2406_s2, 576, %s1877_s6, [#allocation6], %s1761_s14, %s1761_s14, %s1762_s15  }
  0x42   : > { %s1763_s23 = smov [#allocation8]   ;;  %s1591_s8 = scalar_lea.hbm %s2407_s3, 896 }
  0x43   : > { %s211_s27 = sshll.u32 %s1763_s23, 4  ;;  %p1592_p6 = scmp.ne.s32.totalorder %s2407_s3, %s1591_s8  ;;  %s212_s27 = int_to_ptr.vmem [resolvable:$true] %s211_s27 }
  0x44   : > { %p1598_p5 = scmp.lt.u32.totalorder %s1591_s8, %s2407_s3 }
  0x45   : > { %p1594_p10 = pnand %p1592_p6, %p1887_p13 }
  0x47   : > { %p1595_p3 = pneg %p1594_p10 }
  0x49   : > { %p1600_p7 = pnand %p1598_p5, %p1595_p3 }
  0x4b   : > { %1603 = shalt.err (!%p1600_p7)
}
  0x4c   : > { %s1604_s6 = scalar_lea.vmem %s212_s27, 896  ;;  %p1612_p2 = scmp.lt.s32.totalorder %s212_s27, %s212_s27 }
  0x4d   : > { %p1605_p9 = scmp.ne.s32.totalorder %s212_s27, %s1604_s6  ;;  %p1613_p1 = scmp.lt.s32.totalorder %s1604_s6, %s1604_s6 }
  0x4f   : > { %p1607_p12 = pnand %p1605_p9, %p1887_p13  ;;  %p1614_p4 = por %p1613_p1, %p1612_p2 }
  0x51   : > { %p1608_p0 = pneg %p1607_p12 }
  0x53   : > { %p1615_p8 = pnand %p1614_p4, %p1608_p0 }
  0x55   : > { %1618 = shalt.err (!%p1615_p8)
}
  0x56   : > { %s1764_s28 = smov 128   ;;  %s1765_s12 = smov 8  }
  0x57   : > { %1405 = dma.hbm_to_vmem [thread:$0]  (!%p1873_p11), %s2407_s3, 896, %s212_s27, [#allocation9], %s1764_s28, %s1764_s28, %s1765_s12  }
  0x58   : > { %s1950_s16 = sadd.s32 1, %s1755_s21   ;;  %s34_s23 = sadd.s32 1, %s1751_s20 }
  0x59   : > { %s31_s17 = ssub.s32 %s1755_s21, %s1950_s16  ;;  %p41_p8 = scmp.ne.s32.totalorder %s1751_s20, %s1747_s19 }
  0x5a   : > { %p32_p4 = scmp.eq.s32.totalorder %s31_s17, 0  ;;  %p42_p13 = scmp.eq.s32.totalorder %s1755_s21, 0 }
  0x5b   : > { %p1420_p6 = scmp.lt.s32.totalorder %s1755_s21, 2  ;;  %p2418_p3 = scmp.eq.s32.totalorder %s1843_s22, 1 }
  0x5c   : > { %s1960_s30 = scalar_select %p32_p4, %s1751_s20, %s34_s23  }
  0x5d   : > { %p43_p10 = por %p42_p13, %p41_p8  ;;  %p1964_p5 = por %p2418_p3, %p41_p8 }
  0x5e   : > { %s225_s29 = sand.u32 1, %s1751_s20   ;;  %s1375_s8 = sshll.u32 %s1755_s21, 8 }
  0x5f   : > { %s1344_s27 = sshll.u32 %s225_s29, 4  ;;  %s1973_s11 = scalar_lea.hbm %s2404_s0, %s1375_s8 }
  0x60   : > { %s229_s13 = scalar_lea.vmem [#allocation2], %s1344_s27  ;;  %p1975_p11 = pnand %p1420_p6, %p43_p10 }
  0x61   : > { %s237_s6 = sshll.u32 %s229_s13, 4  ;;  %s226_s12 = scalar_lea.sflag [#allocation3], %s225_s29  ;;  %s1979_s6 = int_to_ptr.vmem [resolvable:$true] %s237_s6 }
  0x62   : > { %s1619_s14 = scalar_lea.hbm %s1973_s11, 256  ;;  %p1621_p9 = pneg %p1975_p11 }
  0x63   : > { %p1620_p7 = scmp.ne.s32.totalorder %s1973_s11, %s1619_s14  ;;  %s1624_s23 = scalar_lea.hbm %s2404_s0, 512 }
  0x64   : > { %p1625_p2 = scmp.lt.u32.totalorder %s1973_s11, %s2404_s0  ;;  %p1626_p1 = scmp.lt.u32.totalorder %s1624_s23, %s1619_s14 }
  0x65   : > { %p1622_p12 = pnand %p1621_p9, %p1620_p7  ;;  %p1628_p8 = scmp.lt.u32.totalorder %s1619_s14, %s1973_s11 }
  0x66   : > { %p1627_p4 = por %p1626_p1, %p1625_p2 }
  0x67   : > { %p1623_p0 = pneg %p1622_p12 }
  0x68   : > { %p1629_p13 = por %p1628_p8, %p1627_p4 }
  0x6a   : > { %p1630_p6 = pnand %p1629_p13, %p1623_p0 }
  0x6c   : > { %1633 = shalt.err (!%p1630_p6)
}
  0x6d   : > { %s1634_s29 = scalar_lea.vmem %s1979_s6, 256  ;;  %s1766_s9 = smov [#allocation2]  }
  0x6e   : > { %p1635_p10 = scmp.ne.s32.totalorder %s1979_s6, %s1634_s29  ;;  %s1639_s10 = sshll.u32 %s1766_s9, 4  ;;  %s1640_s10 = int_to_ptr.vmem [resolvable:$false] %s1639_s10 }
  0x6f   : > { %s1641_s13 = scalar_lea.vmem %s1640_s10, 512  ;;  %p1642_p12 = scmp.lt.s32.totalorder %s1979_s6, %s1640_s10 }
  0x70   : > { %p1637_p3 = pnand %p1635_p10, %p1621_p9  ;;  %p1643_p2 = scmp.lt.s32.totalorder %s1641_s13, %s1634_s29 }
  0x72   : > { %p1638_p7 = pneg %p1637_p3  ;;  %p1644_p1 = por %p1643_p2, %p1642_p12 }
  0x74   : > { %p1645_p4 = pnand %p1644_p1, %p1638_p7 }
  0x76   : > { %1648 = shalt.err (!%p1645_p4)
}
  0x77   : > { %1409 = dma.hbm_to_vmem [thread:$0]  (!%p1975_p11), %s1973_s11, 256, %s1979_s6, %s226_s12  }
  0x78   : > { %p2421_p0 = scmp.ne.s32.totalorder %s2415_s26, 0 }
  0x79   : > { %s2009_s14 = sand.u32 (!%p2421_p0), 1, %s1747_s19   ;;  %p2422_p9 = scmp.ne.s32.totalorder (!%p2421_p0), %s2413_s24, 0 }
  0x7a   : > { %246 = sbr.rel (%p2421_p0) target bundleno = 1101 (0x44d), region = 36  ;;  %s1348_s15 = sshll.u32 (!%p2421_p0), %s2009_s14, 4 }
  0x7b   : > { %s249_s17 = scalar_lea.sflag (!%p2421_p0), [#allocation3], %s2009_s14  ;;  %s252_s23 = scalar_lea.vmem (!%p2421_p0), [#allocation2], %s1348_s15 }
  0x81   : > { %1722 = dma.done.wait (%p2422_p9), %s249_s17, 256  }
  0x82   : > { %1724 = vsyncadd (%p2422_p9), %s249_s17, 4294967040  ;;  %p2423_p8 = scmp.eq.s32.totalorder %s1843_s22, 0 }
  0x84   : > { %1726 = dma.done.wait (%p2423_p8), [#allocation6], 2880   ;;  %p2424_p11 = pmov %p2423_p8 }
  0x85   : > { %p2425_p13 = pmov %p2423_p8 }
  0x86   : > { %1728 = vsyncadd (%p2424_p11), [#allocation6], 4294964416 }
  0x87   : > { %1730 = dma.done.wait (%p2425_p13), [#allocation9], 896   ;;  %p2426_p6 = pmov %p2423_p8 }
  0x88   : > { %v1767_v0 = vmov 1   ;;  %v1768_v1 = vmov 0   ;;  %v2027_v2 = vld [vmem:[%s252_s23] sm:$0xff]  ;;  %s1769_s24 = smov 16   ;;  %s1770_s26 = smov 17   ;;  %v2033_v3 = vld [vmem:[%s252_s23 + $0x8] sm:$0xff]  ;;  %v314_v20 = vlaneseq }
  0x89   : > { %1732 = vsyncadd (%p2426_p6), [#allocation9], 4294966400  ;;  %1490 = vset.pattern.permute.xlu1 %v1767_v0  ;;  %1489 = vset.pattern.permute.xlu0 %v1768_v1  ;;  %s1771_s11 = smov 15   ;;  %s1772_s6 = smov 1   ;;  %v298_v4 = vld [vmem:[#allocation8] sm:$0xff]  ;;  %v1777_v5 = vmov 2  }
  0x8a   : > { %325 = vrot.lane.b32.xlu1 %v2027_v2, %s1769_s24  ;;  %310 = vrot.lane.b32.xlu0 %v2027_v2, %s1770_s26  ;;  %s1773_s28 = smov 127   ;;  %s1774_s12 = smov 113   ;;  %v1778_v6 = vmov 3   ;;  %v1779_v7 = vmov 4   ;;  %v1780_v8 = vmov 6   ;;  %v299_v9 = vld [vmem:[#allocation8 + $0x8] sm:$0xff] }
  0x8b   : > { %s1775_s8 = smov 112   ;;  %s1776_s27 = smov 111   ;;  %v1781_v10 = vmov 5   ;;  %v300_v11 = vld [vmem:[#allocation8 + $0x10] sm:$0xff]  ;;  %v1782_v12 = vmov 7   ;;  %v1783_v13 = vmov 8  }
  0x8c   : > { %v301_v14 = vld [vmem:[#allocation8 + $0x18] sm:$0xff]  ;;  %v302_v15 = vld [vmem:[#allocation8 + $0x20] sm:$0xff]  ;;  %v2072_v23 = vand.u32 127, %v314_v20  ;;  %v306_v26 = vld [vmem:[#allocation5 + $0x40] sm:$0xff]  ;;  %s1353_s29 = sshll.u32 %s2009_s14, 2  ;;  %vm764_vm9 = vcmask 1043456  }
  0x8d   : > { %v307_v27 = vld [vmem:[#allocation5 + $0x48] sm:$0xff]  ;;  %v319_v28 = vld [vmem:[#allocation5] sm:$0xff]  ;;  %v308_v35 = vmul.f32 %v306_v26, %v2027_v2  ;;  %v333_v40 = vld [vmem:[#allocation5 + $0x10] sm:$0xff]  ;;  %s2211_s9 = scalar_lea.vmem [#allocation11], %s1353_s29  ;;  %s1784_s10 = smov 126  }
  0x8e   : > { %327 = vrot.lane.b32.xlu1 %v2033_v3, %s1769_s24  ;;  %312 = vrot.lane.b32.xlu0 %v2033_v3, %s1770_s26  ;;  %vm316_vm0 = vcmp.lt.s32.totalorder %v2072_v23, 17  ;;  %v320_v29 = vld [vmem:[#allocation5 + $0x8] sm:$0xff]  ;;  %vm329_vm1 = vcmp.lt.s32.totalorder %v2072_v23, 16  ;;  %v309_v34 = vmul.f32 %v307_v27, %v2033_v3  ;;  %vm343_vm2 = vcmp.lt.s32.totalorder %v2072_v23, 15  ;;  %v334_v41 = vld [vmem:[#allocation5 + $0x18] sm:$0xff]  ;;  %v347_v46 = vld [vmem:[#allocation5 + $0x20] sm:$0xff] }
  0x8f   : > { %vm357_vm3 = vcmp.lt.s32.totalorder %v2072_v23, 1  ;;  %v348_v47 = vld [vmem:[#allocation5 + $0x28] sm:$0xff]  ;;  %vm371_vm4 = vcmp.lt.s32.totalorder %v2072_v23, 127  ;;  %v361_v54 = vld [vmem:[#allocation5 + $0x30] sm:$0xff]  ;;  %v362_v55 = vld [vmem:[#allocation5 + $0x38] sm:$0xff]  ;;  %vm385_vm5 = vcmp.lt.s32.totalorder %v2072_v23, 113 }
  0x90   : > { %v375_v62 = vld [vmem:[#allocation5 + $0x50] sm:$0xff]  ;;  %v376_v63 = vld [vmem:[#allocation5 + $0x58] sm:$0xff]  ;;  %vm399_vm6 = vcmp.lt.s32.totalorder %v2072_v23, 112  ;;  %vm413_vm7 = vcmp.lt.s32.totalorder %v2072_v23, 111  ;;  %s1785_s13 = smov 121   ;;  %s1786_s15 = smov 125  }
  0x91   : > { %s1787_s17 = smov 124   ;;  %s1788_s23 = smov 123  }
  0x92   : > { %341 = vrot.lane.b32.xlu1 %v2033_v3, %s1771_s11  ;;  %339 = vrot.lane.b32.xlu0 %v2027_v2, %s1771_s11  ;;  %s1789_s29 = smov 122  }
  0x96   : > { %355 = vrot.lane.b32.xlu1 %v2033_v3, %s1772_s6  ;;  %353 = vrot.lane.b32.xlu0 %v2027_v2, %s1772_s6 }
  0x9a   : > { %369 = vrot.lane.b32.xlu1 %v2033_v3, %s1773_s28  ;;  %367 = vrot.lane.b32.xlu0 %v2027_v2, %s1773_s28 }
  0x9e   : > { %383 = vrot.lane.b32.xlu1 %v2033_v3, %s1774_s12  ;;  %381 = vrot.lane.b32.xlu0 %v2027_v2, %s1774_s12 }
  0xa2   : > { %397 = vrot.lane.b32.xlu1 %v2033_v3, %s1775_s8  ;;  %395 = vrot.lane.b32.xlu0 %v2027_v2, %s1775_s8 }
  0xa6   : > { %411 = vrot.lane.b32.xlu1 %v2033_v3, %s1776_s27  ;;  %409 = vrot.lane.b32.xlu0 %v2027_v2, %s1776_s27 }
  0xaa   : > { %447 = vperm.xlu1 %1490, %v298_v4   ;;  %433 = vperm.xlu0 %1489, %v298_v4  }
  0xae   : > { %1491 = vset.pattern.permute.xlu1 %v1777_v5  ;;  %1492 = vset.pattern.permute.xlu0 %v1778_v6 }
  0xaf   : > { %463 = vperm.xlu1 %1491, %v298_v4   ;;  %479 = vperm.xlu0 %1492, %v298_v4  }
  0xb3   : > { %1493 = vset.pattern.permute.xlu1 %v1779_v7  ;;  %1495 = vset.pattern.permute.xlu0 %v1780_v8 }
  0xb4   : > { %495 = vperm.xlu1 %1493, %v298_v4   ;;  %527 = vperm.xlu0 %1495, %v298_v4  }
  0xb8   : > { %1494 = vset.pattern.permute.xlu1 %v1781_v10  ;;  %1498 = vset.pattern.permute.xlu0 %v1768_v1 }
  0xb9   : > { %511 = vperm.xlu1 %1494, %v298_v4   ;;  %576 = vperm.xlu0 %1498, %v299_v9  }
  0xbd   : > { %1496 = vset.pattern.permute.xlu1 %v1782_v12  ;;  %1501 = vset.pattern.permute.xlu0 %v1767_v0 }
  0xbe   : > { %543 = vperm.xlu1 %1496, %v298_v4   ;;  %601 = vperm.xlu0 %1501, %v300_v11  }
  0xc2   : > { %1497 = vset.pattern.permute.xlu1 %v1783_v13  ;;  %1503 = vset.pattern.permute.xlu0 %v1778_v6 }
  0xc3   : > { %551 = vperm.xlu1 %1497, %v298_v4   ;;  %645 = vperm.xlu0 %1503, %v299_v9   ;;  %v389_v4 = vld [vmem:[#allocation5 + $0x60] sm:$0xff] }
  0xc7   : > { %1499 = vset.pattern.permute.xlu1 %v1768_v1  ;;  %1506 = vset.pattern.permute.xlu0 %v1779_v7 }
  0xc8   : > { %581 = vperm.xlu1 %1499, %v300_v11   ;;  %665 = vperm.xlu0 %1506, %v300_v11  }
  0xcc   : > { %1500 = vset.pattern.permute.xlu1 %v1767_v0  ;;  %1508 = vset.pattern.permute.xlu0 %v1767_v0 }
  0xcd   : > { %597 = vperm.xlu1 %1500, %v299_v9   ;;  %705 = vperm.xlu0 %1508, %v301_v14  }
  0xd1   : > { %1502 = vset.pattern.permute.xlu1 %v1777_v5  ;;  %1510 = vset.pattern.permute.xlu0 %v1768_v1  ;;  %v390_v5 = vld [vmem:[#allocation5 + $0x68] sm:$0xff] }
  0xd2   : > { %621 = vperm.xlu1 %1502, %v299_v9  }
  0xd6   : > { %625 = vperm.xlu1 %1502, %v300_v11  }
  0xda   : > { %1504 = vset.pattern.permute.xlu1 %v1778_v6 }
  0xdb   : > { %649 = vperm.xlu1 %1504, %v300_v11  }
  0xdf   : > { %1505 = vset.pattern.permute.xlu1 %v1779_v7 }
  0xe0   : > { %661 = vperm.xlu1 %1505, %v299_v9  }
  0xe4   : > { %1507 = vset.pattern.permute.xlu1 %v1768_v1 }
  0xe5   : > { %678 = vperm.xlu1 %1507, %v301_v14   ;;  %v403_v14 = vld [vmem:[#allocation5 + $0x70] sm:$0xff] }
  0xe9   : > { %683 = vperm.xlu1 %1507, %v302_v15  }
  0xed   : > { %1509 = vset.pattern.permute.xlu1 %v1767_v0 }
  0xee   : > { %709 = vperm.xlu1 %1509, %v302_v15   ;;  %v404_v15 = vld [vmem:[#allocation5 + $0x78] sm:$0xff] }
  0xfc   : > { %v326_v16 = vpop.permute.xlu1 %325  ;;  %v311_v17 = vpop.permute.xlu0 %310 }
 0x100   : > { %v328_v18 = vpop.permute.xlu1 %327  ;;  %v313_v19 = vpop.permute.xlu0 %312 }
 0x101   : > { %v317_v30 = vsel %vm316_vm0, %v311_v17, %v313_v19  ;;  %v318_v31 = vsel %vm316_vm0, %v313_v19, %v311_v17  ;;  %v330_v42 = vsel %vm329_vm1, %v326_v16, %v328_v18  ;;  %v331_v43 = vsel %vm329_vm1, %v328_v18, %v326_v16 }
 0x102   : > { %v321_v36 = vmul.f32 %v319_v28, %v318_v31  ;;  %v322_v37 = vmul.f32 %v320_v29, %v317_v30  ;;  %v335_v50 = vmul.f32 %v333_v40, %v331_v43  ;;  %v336_v51 = vmul.f32 %v334_v41, %v330_v42 }
 0x104   : > { %v342_v21 = vpop.permute.xlu1 %341  ;;  %v340_v22 = vpop.permute.xlu0 %339  ;;  %v323_v44 = vadd.f32 %v321_v36, %v308_v35  ;;  %v324_v45 = vadd.f32 %v322_v37, %v309_v34 }
 0x105   : > { %v344_v48 = vsel %vm343_vm2, %v340_v22, %v342_v21  ;;  %v345_v49 = vsel %vm343_vm2, %v342_v21, %v340_v22 }
 0x106   : > { %v338_v58 = vadd.f32 %v336_v51, %v324_v45  ;;  %v337_v59 = vadd.f32 %v335_v50, %v323_v44  ;;  %v349_v60 = vmul.f32 %v347_v46, %v345_v49  ;;  %v350_v61 = vmul.f32 %v348_v47, %v344_v48  ;;  %v2140_v49 = vld [vmem:[#allocation8 + $0x30] sm:$0xff] }
 0x107   : > { %817 = vrot.lane.b32.xlu0 %v2140_v49, %s1773_s28 }
 0x108   : > { %v356_v24 = vpop.permute.xlu1 %355  ;;  %v354_v25 = vpop.permute.xlu0 %353  ;;  %v351_v8 = vadd.f32 %v349_v60, %v337_v59  ;;  %v352_v9 = vadd.f32 %v350_v61, %v338_v58 }
 0x109   : > { %v358_v56 = vsel %vm357_vm3, %v354_v25, %v356_v24  ;;  %v359_v57 = vsel %vm357_vm3, %v356_v24, %v354_v25  ;;  %v417_v24 = vld [vmem:[#allocation5 + $0x80] sm:$0xff]  ;;  %v418_v25 = vld [vmem:[#allocation5 + $0x88] sm:$0xff] }
 0x10a   : > { %v363_v2 = vmul.f32 %v361_v54, %v359_v57  ;;  %v364_v3 = vmul.f32 %v362_v55, %v358_v56 }
 0x10b   : > { %826 = vrot.lane.b32.xlu0 %v2140_v49, %s1784_s10 }
 0x10c   : > { %v370_v32 = vpop.permute.xlu1 %369  ;;  %v368_v33 = vpop.permute.xlu0 %367  ;;  %v365_v18 = vadd.f32 %v363_v2, %v351_v8  ;;  %v366_v19 = vadd.f32 %v364_v3, %v352_v9 }
 0x10d   : > { %v372_v0 = vsel %vm371_vm4, %v368_v33, %v370_v32  ;;  %v373_v1 = vsel %vm371_vm4, %v370_v32, %v368_v33  ;;  %v2117_v32 = vshrl.u32 %v314_v20, 7 }
 0x10e   : > { %v377_v10 = vmul.f32 %v375_v62, %v372_v0  ;;  %v378_v11 = vmul.f32 %v376_v63, %v373_v1 }
 0x10f   : > { %v2124_v41 = vsub.s32 1, %v2117_v32  ;;  %v2127_v42 = vsub.s32 0, %v2117_v32  ;;  %v2130_v43 = vsub.s32 2, %v2117_v32  ;;  %v2149_v56 = vsub.s32 3, %v2117_v32 }
 0x110   : > { %v384_v38 = vpop.permute.xlu1 %383  ;;  %v382_v39 = vpop.permute.xlu0 %381  ;;  %v379_v28 = vadd.f32 %v377_v10, %v365_v18  ;;  %v380_v29 = vadd.f32 %v378_v11, %v366_v19  ;;  %v2152_v58 = vsub.s32 4, %v2117_v32  ;;  %v2166_v10 = vsub.s32 6, %v2117_v32 }
 0x111   : > { %v386_v6 = vsel %vm385_vm5, %v382_v39, %v384_v38  ;;  %v387_v7 = vsel %vm385_vm5, %v384_v38, %v382_v39  ;;  %vm922_vm8 = vcmp.eq.s32.totalorder %v2117_v32, 0 }
 0x112   : > { %v391_v21 = vmul.f32 %v389_v4, %v386_v6  ;;  %v392_v22 = vmul.f32 %v390_v5, %v387_v7  ;;  %v2159_v4 = vsub.s32 5, %v2117_v32 }
 0x114   : > { %v398_v52 = vpop.permute.xlu1 %397  ;;  %v396_v53 = vpop.permute.xlu0 %395  ;;  %v393_v33 = vadd.f32 %v391_v21, %v379_v28  ;;  %v394_v34 = vadd.f32 %v392_v22, %v380_v29  ;;  %v2177_v22 = vsub.s32 7, %v2117_v32 }
 0x115   : > { %v400_v16 = vsel %vm399_vm6, %v396_v53, %v398_v52  ;;  %v401_v17 = vsel %vm399_vm6, %v398_v52, %v396_v53 }
 0x116   : > { %v405_v30 = vmul.f32 %v403_v14, %v400_v16  ;;  %v406_v31 = vmul.f32 %v404_v15, %v401_v17 }
 0x118   : > { %v412_v12 = vpop.permute.xlu1 %411  ;;  %v410_v13 = vpop.permute.xlu0 %409  ;;  %v407_v37 = vadd.f32 %v405_v30, %v393_v33  ;;  %v408_v38 = vadd.f32 %v406_v31, %v394_v34 }
 0x119   : > { %v414_v26 = vsel %vm413_vm7, %v410_v13, %v412_v12  ;;  %v415_v27 = vsel %vm413_vm7, %v412_v12, %v410_v13 }
 0x11a   : > { %v419_v35 = vmul.f32 %v417_v24, %v414_v26  ;;  %v420_v36 = vmul.f32 %v418_v25, %v415_v27 }
 0x11c   : > { %v2119_v39 = vadd.f32 %v419_v35, %v407_v37  ;;  %v2121_v40 = vadd.f32 %v420_v36, %v408_v38 }
 0x11e   : > { %v441_v44 = vrot.slane %v2119_v39, %v2124_v41  ;;  %v445_v45 = vrot.slane %v2121_v40, %v2124_v41  ;;  %v430_v46 = vrot.slane %v2121_v40, %v2127_v42  ;;  %v426_v48 = vrot.slane %v2119_v39, %v2127_v42 }
 0x11f   : > { %v457_v54 = vrot.slane %v2119_v39, %v2130_v43  ;;  %v461_v55 = vrot.slane %v2121_v40, %v2130_v43  ;;  %v477_v2 = vrot.slane %v2121_v40, %v2149_v56  ;;  %v473_v3 = vrot.slane %v2119_v39, %v2149_v56 }
 0x120   : > { %v489_v8 = vrot.slane %v2119_v39, %v2152_v58  ;;  %v493_v9 = vrot.slane %v2121_v40, %v2152_v58  ;;  %v505_v15 = vrot.slane %v2119_v39, %v2159_v4  ;;  %v509_v16 = vrot.slane %v2121_v40, %v2159_v4 }
 0x121   : > { %v525_v17 = vrot.slane %v2121_v40, %v2166_v10  ;;  %v521_v19 = vrot.slane %v2119_v39, %v2166_v10  ;;  %v537_v33 = vrot.slane %v2119_v39, %v2177_v22  ;;  %v541_v34 = vrot.slane %v2121_v40, %v2177_v22 }
 0x129   : > { %v448_v20 = vpop.permute.xlu1 %447  ;;  %v434_v47 = vpop.permute.xlu0 %433 }
 0x12a   : > { %v450_v50 = vmul.f32 %v448_v20, %v441_v44  ;;  %v451_v51 = vmul.f32 %v448_v20, %v445_v45  ;;  %v436_v52 = vmul.f32 %v434_v47, %v426_v48  ;;  %v437_v53 = vmul.f32 %v434_v47, %v430_v46 }
 0x12c   : > { %v452_v59 = vadd.f32 %v450_v50, %v436_v52  ;;  %v453_v60 = vadd.f32 %v451_v51, %v437_v53 }
 0x12e   : > { %v464_v57 = vpop.permute.xlu1 %463  ;;  %v480_v63 = vpop.permute.xlu0 %479 }
 0x12f   : > { %v466_v61 = vmul.f32 %v464_v57, %v457_v54  ;;  %v467_v62 = vmul.f32 %v464_v57, %v461_v55  ;;  %v482_v5 = vmul.f32 %v480_v63, %v473_v3  ;;  %v483_v6 = vmul.f32 %v480_v63, %v477_v2 }
 0x131   : > { %v468_v0 = vadd.f32 %v466_v61, %v452_v59  ;;  %v469_v1 = vadd.f32 %v467_v62, %v453_v60 }
 0x133   : > { %v496_v7 = vpop.permute.xlu1 %495  ;;  %v484_v11 = vadd.f32 %v482_v5, %v468_v0  ;;  %v485_v12 = vadd.f32 %v483_v6, %v469_v1  ;;  %v528_v18 = vpop.permute.xlu0 %527 }
 0x134   : > { %v498_v13 = vmul.f32 %v496_v7, %v489_v8  ;;  %v499_v14 = vmul.f32 %v496_v7, %v493_v9  ;;  %v530_v28 = vmul.f32 %v528_v18, %v521_v19  ;;  %v531_v29 = vmul.f32 %v528_v18, %v525_v17 }
 0x136   : > { %v500_v24 = vadd.f32 %v498_v13, %v484_v11  ;;  %v501_v25 = vadd.f32 %v499_v14, %v485_v12 }
 0x138   : > { %v512_v21 = vpop.permute.xlu1 %511  ;;  %v577_v57 = vpop.permute.xlu0 %576 }
 0x139   : > { %v514_v26 = vmul.f32 %v512_v21, %v505_v15  ;;  %v515_v27 = vmul.f32 %v512_v21, %v509_v16 }
 0x13b   : > { %v516_v30 = vadd.f32 %v514_v26, %v500_v24  ;;  %v517_v31 = vadd.f32 %v515_v27, %v501_v25 }
 0x13d   : > { %v544_v35 = vpop.permute.xlu1 %543  ;;  %v532_v36 = vadd.f32 %v530_v28, %v516_v30  ;;  %v533_v37 = vadd.f32 %v531_v29, %v517_v31  ;;  %v602_v0 = vpop.permute.xlu0 %601 }
 0x13e   : > { %v546_v38 = vmul.f32 %v544_v35, %v537_v33  ;;  %v547_v20 = vmul.f32 %v544_v35, %v541_v34 }
 0x140   : > { %v548_v44 = vadd.f32 %v546_v38, %v532_v36  ;;  %v549_v45 = vadd.f32 %v547_v20, %v533_v37 }
 0x142   : > { %v552_v46 = vpop.permute.xlu1 %551  ;;  %v646_v27 = vpop.permute.xlu0 %645 }
 0x143   : > { %v554_v47 = vadd.f32 %v552_v46, %v548_v44  ;;  %v555_v48 = vadd.f32 %v552_v46, %v549_v45 }
 0x145   : > { %v2183_v50 = vmax.f32 %v554_v47, 0.0  ;;  %v2185_v51 = vmax.f32 %v555_v48, 0.0 }
 0x147   : > { %v582_v52 = vpop.permute.xlu1 %581  ;;  %v560_v39 = vrot.slane %v2183_v50, 4  ;;  %v561_v53 = vrot.slane %v2185_v51, 4  ;;  %v666_v47 = vpop.permute.xlu0 %665 }
 0x149   : > { %v564_v54 = vadd.f32 %v560_v39, %v2183_v50  ;;  %v565_v55 = vadd.f32 %v561_v53, %v2185_v51 }
 0x14b   : > { %v573_v59 = vrot.slane %v565_v55, %v2127_v42  ;;  %v569_v60 = vrot.slane %v564_v54, %v2127_v42  ;;  %v595_v61 = vrot.slane %v565_v55, %v2124_v41  ;;  %v591_v62 = vrot.slane %v564_v54, %v2124_v41 }
 0x14c   : > { %v598_v40 = vpop.permute.xlu1 %597  ;;  %v615_v1 = vrot.slane %v564_v54, %v2130_v43  ;;  %v619_v2 = vrot.slane %v565_v55, %v2130_v43  ;;  %v643_v16 = vrot.slane %v565_v55, %v2149_v56  ;;  %v639_v17 = vrot.slane %v564_v54, %v2149_v56 }
 0x14d   : > { %v584_v3 = vmul.f32 %v577_v57, %v569_v60  ;;  %v585_v5 = vmul.f32 %v577_v57, %v573_v59  ;;  %v604_v6 = vmul.f32 %v598_v40, %v591_v62  ;;  %v605_v7 = vmul.f32 %v598_v40, %v595_v61 }
 0x14e   : > { %v586_v9 = vmul.f32 %v582_v52, %v569_v60  ;;  %v587_v11 = vmul.f32 %v582_v52, %v573_v59  ;;  %v606_v12 = vmul.f32 %v602_v0, %v591_v62  ;;  %v607_v13 = vmul.f32 %v602_v0, %v595_v61 }
 0x14f   : > { %v608_v18 = vadd.f32 %v604_v6, %v584_v3  ;;  %v609_v19 = vadd.f32 %v605_v7, %v585_v5  ;;  %v652_v34 = vmul.f32 %v646_v27, %v639_v17  ;;  %v653_v35 = vmul.f32 %v646_v27, %v643_v16 }
 0x150   : > { %v610_v25 = vadd.f32 %v606_v12, %v586_v9  ;;  %v611_v26 = vadd.f32 %v607_v13, %v587_v11 }
 0x151   : > { %v622_v63 = vpop.permute.xlu1 %621 }
 0x152   : > { %v628_v14 = vmul.f32 %v622_v63, %v615_v1  ;;  %v629_v15 = vmul.f32 %v622_v63, %v619_v2 }
 0x154   : > { %v632_v29 = vadd.f32 %v628_v14, %v608_v18  ;;  %v633_v30 = vadd.f32 %v629_v15, %v609_v19 }
 0x155   : > { %v626_v8 = vpop.permute.xlu1 %625 }
 0x156   : > { %v630_v21 = vmul.f32 %v626_v8, %v615_v1  ;;  %v631_v24 = vmul.f32 %v626_v8, %v619_v2  ;;  %v656_v45 = vadd.f32 %v652_v34, %v632_v29  ;;  %v657_v46 = vadd.f32 %v653_v35, %v633_v30  ;;  %v706_v1 = vpop.permute.xlu0 %705 }
 0x158   : > { %v634_v36 = vadd.f32 %v630_v21, %v610_v25  ;;  %v635_v37 = vadd.f32 %v631_v24, %v611_v26 }
 0x15a   : > { %v650_v28 = vpop.permute.xlu1 %649 }
 0x15b   : > { %v654_v31 = vmul.f32 %v650_v28, %v639_v17  ;;  %v655_v33 = vmul.f32 %v650_v28, %v643_v16 }
 0x15d   : > { %v659_v38 = vadd.f32 %v655_v33, %v635_v37  ;;  %v658_v20 = vadd.f32 %v654_v31, %v634_v36 }
 0x15f   : > { %v662_v44 = vpop.permute.xlu1 %661  ;;  %v670_v39 = vadd.f32 %v666_v47, %v658_v20  ;;  %v671_v53 = vadd.f32 %v666_v47, %v659_v38 }
 0x160   : > { %v668_v48 = vadd.f32 %v662_v44, %v656_v45  ;;  %v669_v52 = vadd.f32 %v662_v44, %v657_v46 }
 0x161   : > { %v674_v57 = vmax.f32 %v670_v39, 0.0  ;;  %v675_v59 = vmax.f32 %v671_v53, 0.0 }
 0x162   : > { %v672_v54 = vmax.f32 %v668_v48, 0.0  ;;  %v673_v55 = vmax.f32 %v669_v52, 0.0 }
 0x164   : > { %v679_v40 = vpop.permute.xlu1 %678  ;;  %v712_v8 = vmul.f32 %v706_v1, %v672_v54  ;;  %v713_v9 = vmul.f32 %v706_v1, %v673_v55 }
 0x165   : > { %v686_v61 = vmul.f32 %v679_v40, %v672_v54  ;;  %v687_v62 = vmul.f32 %v679_v40, %v673_v55 }
 0x168   : > { %v684_v60 = vpop.permute.xlu1 %683 }
 0x169   : > { %v688_v63 = vmul.f32 %v684_v60, %v674_v57  ;;  %v689_v0 = vmul.f32 %v684_v60, %v675_v59 }
 0x16b   : > { %v690_v2 = vadd.f32 %v688_v63, %v686_v61  ;;  %v697_v3 = vadd.f32 %v689_v0, %v687_v62 }
 0x16d   : > { %v691_v5 = vrot.slane %v690_v2, 4  ;;  %v698_v6 = vrot.slane %v697_v3, 4  ;;  %v710_v7 = vpop.permute.xlu1 %709 }
 0x16e   : > { %v714_v11 = vmul.f32 %v710_v7, %v674_v57  ;;  %v715_v12 = vmul.f32 %v710_v7, %v675_v59 }
 0x16f   : > { %v692_v13 = vadd.f32 %v691_v5, %v690_v2  ;;  %v699_v14 = vadd.f32 %v698_v6, %v697_v3 }
 0x170   : > { %v716_v15 = vadd.f32 %v714_v11, %v712_v8  ;;  %v723_v16 = vadd.f32 %v715_v12, %v713_v9 }
 0x171   : > { %v693_v17 = vrot.slane %v692_v13, 2  ;;  %v700_v18 = vrot.slane %v699_v14, 2 }
 0x172   : > { %v717_v19 = vrot.slane %v716_v15, 4  ;;  %v724_v21 = vrot.slane %v723_v16, 4 }
 0x173   : > { %v694_v24 = vadd.f32 %v693_v17, %v692_v13  ;;  %v701_v25 = vadd.f32 %v700_v18, %v699_v14 }
 0x174   : > { %v718_v26 = vadd.f32 %v717_v19, %v716_v15  ;;  %v725_v27 = vadd.f32 %v724_v21, %v723_v16 }
 0x175   : > { %v695_v30 = vrot.slane %v694_v24, 1  ;;  %v702_v31 = vrot.slane %v701_v25, 1 }
 0x176   : > { %v719_v28 = vrot.slane %v718_v26, 2  ;;  %v726_v29 = vrot.slane %v725_v27, 2 }
 0x177   : > { %v696_v37 = vadd.f32 %v695_v30, %v694_v24  ;;  %v703_v38 = vadd.f32 %v702_v31, %v701_v25  ;;  %v303_v25 = vld [vmem:[#allocation8 + $0x28] sm:$0xff] }
 0x178   : > { %v720_v33 = vadd.f32 %v719_v28, %v718_v26  ;;  %v727_v34 = vadd.f32 %v726_v29, %v725_v27 }
 0x17a   : > { %v721_v35 = vrot.slane %v720_v33, 1  ;;  %v728_v36 = vrot.slane %v727_v34, 1 }
 0x17c   : > { %v722_v20 = vadd.f32 %v721_v35, %v720_v33  ;;  %v729_v44 = vadd.f32 %v728_v36, %v727_v34  ;;  %v818_v35 = vpop.permute.xlu0 %817 }
 0x17e   : > { %v730_v45 = vmax.f32 %v696_v37, %v722_v20  ;;  %v731_v46 = vmax.f32 %v703_v38, %v729_v44 }
 0x180   : > { %v732_v47 = vsub.f32 %v696_v37, %v730_v45  ;;  %v733_v48 = vsub.f32 %v703_v38, %v731_v46  ;;  %v738_v52 = vsub.f32 %v722_v20, %v730_v45  ;;  %v739_v39 = vsub.f32 %v729_v44, %v731_v46  ;;  %v827_v36 = vpop.permute.xlu0 %826 }
 0x182   : > { %v734_v53 = vmul.f32 1.442695, %v732_v47  ;;  %v736_v40 = vmul.f32 1.442695, %v733_v48  ;;  %v740_v54 = vmul.f32 1.442695, %v738_v52 }
 0x183   : > { %v742_v55 = vmul.f32 1.442695, %v739_v39 }
 0x184   : > { %1511 = vpow2.f32 %v734_v53 }
 0x185   : > { %1513 = vpow2.f32 %v736_v40 }
 0x186   : > { %1515 = vpow2.f32 %v740_v54 }
 0x187   : > { %1517 = vpow2.f32 %v742_v55 }
 0x18e   : > { %v1512_v57 = vpop.eup %1511 }
 0x18f   : > { %v1514_v59 = vpop.eup %1513 }
 0x190   : > { %v1516_v60 = vpop.eup %1515 }
 0x191   : > { %v1518_v61 = vpop.eup %1517  ;;  %v744_v62 = vadd.f32 %v1516_v60, %v1512_v57 }
 0x192   : > { %v745_v63 = vadd.f32 %v1518_v61, %v1514_v59 }
 0x193   : > { %1519 = vrcp.f32 %v744_v62 }
 0x194   : > { %1521 = vrcp.f32 %v745_v63 }
 0x19d   : > { %v1520_v0 = vpop.eup %1519 }
 0x19e   : > { %v1522_v1 = vpop.eup %1521  ;;  %v748_v2 = vmul.f32 %v1520_v0, %v1512_v57  ;;  %v750_v3 = vmul.f32 %v1520_v0, %v1516_v60 }
 0x19f   : > { %v749_v5 = vmul.f32 %v1522_v1, %v1514_v59  ;;  %v751_v6 = vmul.f32 %v1522_v1, %v1518_v61 }
 0x1a0   : > { %v754_v7 = vmul.f32 %v750_v3, %v2183_v50  ;;  %v1159_v8 = vsel %vm922_vm8, %v748_v2, %v750_v3  ;;  %v752_v12 = vmul.f32 %v748_v2, %v2183_v50 }
 0x1a1   : > { %v755_v9 = vmul.f32 %v751_v6, %v2185_v51  ;;  %v1160_v11 = vsel %vm922_vm8, %v749_v5, %v751_v6  ;;  %v753_v15 = vmul.f32 %v749_v5, %v2185_v51 }
 0x1a2   : > { %v758_v13 = vrot.slane %v754_v7, 4  ;;  %v1163_v14 = vcombine.low %v1159_v8, %v1160_v11 }
 0x1a3   : > { %v759_v16 = vrot.slane %v755_v9, 4 }
 0x1a4   : > { %v2209_v17 = vadd.f32 %v758_v13, %v752_v12  ;;  %1366 = vst.sshfl [vmem:[%s2211_s9] sm:$0x33 pattern:$0x76325410] %v1163_v14 }
 0x1a5   : > { %v2214_v18 = vadd.f32 %v759_v16, %v753_v15 }
 0x1a6   : > { %v765_v19 = vsel %vm764_vm9, %v2209_v17, 0.0 }
 0x1a7   : > { %v766_v50 = vsel %vm764_vm9, %v2214_v18, 0.0 }
 0x1a8   : > { %v767_v21 = vadd.f32 %v766_v50, %v765_v19 }
 0x1aa   : > { %768 = vadd.xlane.f32.xlu1 %v767_v21 }
 0x1bb   : > { %871 = vrot.lane.b32.xlu1 %v2140_v49, %s1785_s13 }
 0x237   : > { %v769_v51 = vpop.xlane.xlu1 %768 }
 0x238   : > { %v770_v24 = vmul.f32 0.00390625, %v769_v51 }
 0x23a   : > { %v779_v26 = vrot.slane %v770_v24, %v2124_v41  ;;  %v774_v27 = vrot.slane %v770_v24, %v2127_v42  ;;  %v789_v29 = vrot.slane %v770_v24, %v2130_v43  ;;  %v799_v33 = vrot.slane %v770_v24, %v2149_v56 }
 0x23b   : > { %v872_v5 = vpop.permute.xlu1 %871 }
 0x23c   : > { %v780_v28 = vmul.f32 %v779_v26, %v303_v25  ;;  %v775_v30 = vmul.f32 %v774_v27, %v303_v25  ;;  %v790_v31 = vmul.f32 %v789_v29, %v303_v25  ;;  %v800_v34 = vmul.f32 %v799_v33, %v303_v25 }
 0x23e   : > { %782 = vrot.lane.b32.xlu0 %v780_v28, %s1773_s28 }
 0x242   : > { %792 = vrot.lane.b32.xlu0 %v790_v31, %s1784_s10 }
 0x246   : > { %802 = vrot.lane.b32.xlu0 %v800_v34, %s1786_s15 }
 0x24a   : > { %835 = vrot.lane.b32.xlu0 %v2140_v49, %s1786_s15 }
 0x24e   : > { %844 = vrot.lane.b32.xlu0 %v2140_v49, %s1787_s17 }
 0x252   : > { %853 = vrot.lane.b32.xlu0 %v2140_v49, %s1788_s23 }
 0x256   : > { %862 = vrot.lane.b32.xlu0 %v2140_v49, %s1789_s29 }
 0x2b0   : > { %v783_v37 = vpop.permute.xlu0 %782 }
 0x2b1   : > { %v785_v20 = vadd.f32 %v783_v37, %v775_v30 }
 0x2b4   : > { %v793_v38 = vpop.permute.xlu0 %792 }
 0x2b5   : > { %v795_v44 = vadd.f32 %v793_v38, %v785_v20 }
 0x2b8   : > { %v803_v45 = vpop.permute.xlu0 %802 }
 0x2b9   : > { %v805_v46 = vadd.f32 %v803_v45, %v795_v44 }
 0x2bb   : > { %v806_v47 = vmax.f32 %v805_v46, 0.0 }
 0x2bc   : > { %v836_v48 = vpop.permute.xlu0 %835 }
 0x2bd   : > { %v810_v52 = vrot.slane %v806_v47, %v2127_v42  ;;  %v815_v39 = vrot.slane %v806_v47, %v2124_v41  ;;  %v825_v53 = vrot.slane %v806_v47, %v2130_v43  ;;  %v834_v55 = vrot.slane %v806_v47, %v2149_v56 }
 0x2be   : > { %v843_v63 = vrot.slane %v806_v47, %v2152_v58  ;;  %v852_v42 = vrot.slane %v806_v47, %v2159_v4  ;;  %v870_v41 = vrot.slane %v806_v47, %v2177_v22 }
 0x2bf   : > { %v811_v40 = vmul.f32 %v810_v52, %v2140_v49  ;;  %v820_v54 = vmul.f32 %v818_v35, %v815_v39  ;;  %v829_v60 = vmul.f32 %v827_v36, %v825_v53  ;;  %v838_v62 = vmul.f32 %v836_v48, %v834_v55 }
 0x2c0   : > { %v845_v57 = vpop.permute.xlu0 %844  ;;  %v861_v49 = vrot.slane %v806_v47, %v2166_v10  ;;  %v874_v8 = vmul.f32 %v872_v5, %v870_v41 }
 0x2c1   : > { %v821_v59 = vadd.f32 %v820_v54, %v811_v40  ;;  %v847_v2 = vmul.f32 %v845_v57, %v843_v63 }
 0x2c3   : > { %v830_v61 = vadd.f32 %v829_v60, %v821_v59 }
 0x2c4   : > { %v854_v0 = vpop.permute.xlu0 %853 }
 0x2c5   : > { %v839_v1 = vadd.f32 %v838_v62, %v830_v61  ;;  %v856_v3 = vmul.f32 %v854_v0, %v852_v42 }
 0x2c7   : > { %v848_v43 = vadd.f32 %v847_v2, %v839_v1 }
 0x2c8   : > { %v863_v56 = vpop.permute.xlu0 %862 }
 0x2c9   : > { %v857_v6 = vadd.f32 %v856_v3, %v848_v43  ;;  %v865_v7 = vmul.f32 %v863_v56, %v861_v49 }
 0x2cb   : > { %v866_v9 = vadd.f32 %v865_v7, %v857_v6 }
 0x2cd   : > { %v875_v11 = vadd.f32 %v874_v8, %v866_v9 }
 0x2cf   : > { %v1354_v12 = vmul.f32 -1.442695, %v875_v11 }
 0x2d1   : > { %1523 = vpow2.f32 %v1354_v12 }
 0x2db   : > { %v1524_v58 = vpop.eup %1523 }
 0x2dc   : > { %v879_v13 = vadd.f32 1.0, %v1524_v58 }
 0x2de   : > { %1525 = vrcp.f32 %v879_v13 }
 0x2e8   : > { %v1526_v14 = vpop.eup %1525 }
 0x2e9   : > { %884 = vperm.xlu0 %1510, %v1526_v14  }
 0x368   : > { %v885_v4 = vpop.permute.xlu0 %884 }
 0x369   : > { %v2241_v22 = vmul.f32 %v885_v4, %v2209_v17  ;;  %v2244_v10 = vmul.f32 %v885_v4, %v2214_v18 }
 0x36b   : > { %v891_v15 = vsel %vm764_vm9, %v2241_v22, 0.0  ;;  %v898_v16 = vsel %vm764_vm9, %v2244_v10, 0.0  ;;  %v908_v19 = vsel %vm764_vm9, %v2241_v22, -inf  ;;  %v915_v50 = vsel %vm764_vm9, %v2244_v10, -inf }
 0x36c   : > { %v892_v21 = vrot.slane %v891_v15, 4  ;;  %v899_v51 = vrot.slane %v898_v16, 4  ;;  %v909_v24 = vrot.slane %v908_v19, 4  ;;  %v916_v17 = vrot.slane %v915_v50, 4 }
 0x36e   : > { %v893_v25 = vadd.f32 %v892_v21, %v891_v15  ;;  %v900_v26 = vadd.f32 %v899_v51, %v898_v16  ;;  %v910_v18 = vmax.f32 %v908_v19, %v909_v24  ;;  %v917_v27 = vmax.f32 %v915_v50, %v916_v17 }
 0x370   : > { %v894_v28 = vrot.slane %v893_v25, 2  ;;  %v901_v29 = vrot.slane %v900_v26, 2  ;;  %v911_v30 = vrot.slane %v910_v18, 2  ;;  %v918_v31 = vrot.slane %v917_v27, 2 }
 0x372   : > { %v895_v33 = vadd.f32 %v894_v28, %v893_v25  ;;  %v902_v34 = vadd.f32 %v901_v29, %v900_v26  ;;  %v912_v35 = vmax.f32 %v910_v18, %v911_v30  ;;  %v919_v20 = vmax.f32 %v917_v27, %v918_v31 }
 0x374   : > { %v896_v36 = vrot.slane %v895_v33, 1  ;;  %v903_v37 = vrot.slane %v902_v34, 1  ;;  %v913_v38 = vrot.slane %v912_v35, 1  ;;  %v920_v48 = vrot.slane %v919_v20, 1 }
 0x376   : > { %v897_v44 = vadd.f32 %v896_v36, %v895_v33  ;;  %v904_v45 = vadd.f32 %v903_v37, %v902_v34  ;;  %v914_v47 = vmax.f32 %v912_v35, %v913_v38  ;;  %v921_v53 = vmax.f32 %v919_v20, %v920_v48 }
 0x378   : > { %v906_v46 = vmul.f32 0.25, %v897_v44  ;;  %v907_v52 = vmul.f32 0.25, %v904_v45 }
 0x37a   : > { %v2256_v39 = vsel %vm922_vm8, %v906_v46, %v914_v47  ;;  %v2264_v40 = vsel %vm922_vm8, %v907_v52, %v921_v53 }
 0x37b   : > { %964 = vrot.lane.b32.xlu1 %v2256_v39, %s1769_s24  ;;  %942 = vrot.lane.b32.xlu0 %v2256_v39, %s1770_s26 }
 0x37f   : > { %987 = vrot.lane.b32.xlu1 %v2256_v39, %s1771_s11  ;;  %944 = vrot.lane.b32.xlu0 %v2264_v40, %s1770_s26  ;;  %s1207_s26 = sshll.u32 %s2211_s9, 4  ;;  %s1208_s26 = int_to_ptr.vmem [resolvable:$true] %s1207_s26 }
 0x380   : > { %s1649_s13 = scalar_lea.vmem %s1208_s26, 64 }
 0x381   : > { %p1650_p10 = scmp.ne.s32.totalorder %s1208_s26, %s1649_s13 }
 0x383   : > { %1010 = vrot.lane.b32.xlu1 %v2256_v39, %s1772_s6  ;;  %966 = vrot.lane.b32.xlu0 %v2264_v40, %s1769_s24  ;;  %s1377_s24 = sshll.u32 %s1843_s22, 6  ;;  %p1651_p3 = pnand %p1650_p10, %p1964_p5 }
 0x384   : > { %s2299_s10 = scalar_lea.hbm %s2409_s5, %s1377_s24 }
 0x385   : > { %p1652_p7 = pneg %p1651_p3 }
 0x387   : > { %1033 = vrot.lane.b32.xlu1 %v2256_v39, %s1773_s28  ;;  %989 = vrot.lane.b32.xlu0 %v2264_v40, %s1771_s11 }
 0x38b   : > { %1056 = vrot.lane.b32.xlu1 %v2256_v39, %s1774_s12  ;;  %1012 = vrot.lane.b32.xlu0 %v2264_v40, %s1772_s6 }
 0x38f   : > { %1079 = vrot.lane.b32.xlu1 %v2256_v39, %s1775_s8  ;;  %1035 = vrot.lane.b32.xlu0 %v2264_v40, %s1773_s28  ;;  %s1179_s28 = scalar_lea.sflag [#allocation12], %s2009_s14 }
 0x393   : > { %1102 = vrot.lane.b32.xlu1 %v2256_v39, %s1776_s27  ;;  %1058 = vrot.lane.b32.xlu0 %v2264_v40, %s1774_s12  ;;  %s1790_s12 = smov [#allocation11]  }
 0x394   : > { %s1653_s15 = sshll.u32 %s1790_s12, 4  ;;  %s1654_s15 = int_to_ptr.vmem [resolvable:$false] %s1653_s15 }
 0x395   : > { %p1656_p12 = scmp.lt.s32.totalorder %s1208_s26, %s1654_s15 }
 0x397   : > { %1081 = vrot.lane.b32.xlu0 %v2264_v40, %s1775_s8  ;;  %s1655_s8 = scalar_lea.vmem %s1654_s15, 128 }
 0x398   : > { %p1657_p2 = scmp.lt.s32.totalorder %s1655_s8, %s1649_s13 }
 0x39a   : > { %p1658_p1 = por %p1657_p2, %p1656_p12 }
 0x39b   : > { %1104 = vrot.lane.b32.xlu0 %v2264_v40, %s1776_s27 }
 0x39c   : > { %p1659_p4 = pnand %p1658_p1, %p1652_p7 }
 0x39e   : > { %1662 = shalt.err (!%p1659_p4)
}
 0x39f   : > { %s1663_s27 = scalar_lea.hbm %s2299_s10, 64  ;;  %s1667_s23 = scalar_lea.hbm %s2409_s5, 128 }
 0x3a0   : > { %p1664_p0 = scmp.ne.s32.totalorder %s2299_s10, %s1663_s27  ;;  %p1668_p11 = scmp.lt.u32.totalorder %s2299_s10, %s2409_s5 }
 0x3a1   : > { %p1669_p13 = scmp.lt.u32.totalorder %s1667_s23, %s1663_s27  ;;  %p1671_p10 = scmp.lt.u32.totalorder %s1663_s27, %s2299_s10 }
 0x3a2   : > { %p1665_p9 = pnand %p1664_p0, %p1964_p5 }
 0x3a3   : > { %p1670_p6 = por %p1669_p13, %p1668_p11 }
 0x3a4   : > { %p1666_p8 = pneg %p1665_p9 }
 0x3a5   : > { %p1672_p3 = por %p1671_p10, %p1670_p6 }
 0x3a7   : > { %p1673_p7 = pnand %p1672_p3, %p1666_p8 }
 0x3a9   : > { %1676 = shalt.err (!%p1673_p7)
}
 0x3aa   : > { %1393 = dma.vmem_to_hbm [thread:$0]  (%p1964_p5), %s1208_s26, 64, %s2299_s10, %s1179_s28   ;;  %v1356_v61 = vld.sshfl [vmem:[#allocation7] sm:$0x33 pattern:$0x76325410]  ;;  %vm1125_vm10 = vcmask 1041408  }
 0x3ab   : > { %v1355_v62 = vld.sshfl [vmem:[#allocation7 + $0x10] sm:$0x33 pattern:$0x76325410]  ;;  %v957_v1 = vcombine.high %v1356_v61, %v1356_v61  ;;  %s1352_s26 = sshll.u32 %s2009_s14, 3  ;;  %s1376_s11 = sshll.u32 %s1843_s22, 7 }
 0x3ac   : > { %v1357_v0 = vld.sshfl [vmem:[#allocation7 + $0x4] sm:$0x33 pattern:$0x76325410]  ;;  %v937_v42 = vcombine.high %v1355_v62, %v1355_v62  ;;  %v940_v4 = vmul.f32 %v1355_v62, %v2256_v39  ;;  %s288_s6 = scalar_lea.vmem [#allocation10], %s1352_s26  ;;  %s2360_s12 = scalar_lea.hbm %s2408_s4, %s1376_s11 }
 0x3ad   : > { %v1358_v3 = vld.sshfl [vmem:[#allocation7 + $0x8] sm:$0x33 pattern:$0x76325410]  ;;  %v980_v49 = vcombine.high %v1357_v0, %v1357_v0  ;;  %s1193_s10 = sshll.u32 %s288_s6, 4  ;;  %s1174_s15 = scalar_lea.sflag [#allocation4], %s2009_s14  ;;  %s2362_s10 = int_to_ptr.vmem [resolvable:$true] %s1193_s10 }
 0x3ae   : > { %v1359_v7 = vld.sshfl [vmem:[#allocation7 + $0xc] sm:$0x33 pattern:$0x76325410]  ;;  %v1003_v11 = vcombine.high %v1358_v3, %v1358_v3  ;;  %v941_v58 = vmul.f32 %v937_v42, %v2264_v40  ;;  %s1677_s8 = scalar_lea.vmem %s2362_s10, 128  ;;  %s1791_s22 = smov [#allocation10]  }
 0x3af   : > { %v1360_v12 = vld.sshfl [vmem:[#allocation7 + $0x14] sm:$0x33 pattern:$0x76325410]  ;;  %v1026_v50 = vcombine.high %v1359_v7, %v1359_v7  ;;  %p1678_p12 = scmp.ne.s32.totalorder %s2362_s10, %s1677_s8  ;;  %s1681_s27 = sshll.u32 %s1791_s22, 4  ;;  %s1682_s27 = int_to_ptr.vmem [resolvable:$false] %s1681_s27 }
 0x3b0   : > { %v1361_v51 = vld.sshfl [vmem:[#allocation7 + $0x18] sm:$0x33 pattern:$0x76325410]  ;;  %v1049_v25 = vcombine.high %v1360_v12, %v1360_v12  ;;  %s1683_s9 = scalar_lea.vmem %s1682_s27, 256  ;;  %p1684_p4 = scmp.lt.s32.totalorder %s2362_s10, %s1682_s27 }
 0x3b1   : > { %v1362_v29 = vld.sshfl [vmem:[#allocation7 + $0x1c] sm:$0x33 pattern:$0x76325410]  ;;  %v1072_v33 = vcombine.high %v1361_v51, %v1361_v51  ;;  %p1679_p2 = pnand %p1678_p12, %p1964_p5  ;;  %p1685_p0 = scmp.lt.s32.totalorder %s1683_s9, %s1677_s8 }
 0x3b2   : > { %v1095_v45 = vcombine.high %v1362_v29, %v1362_v29  ;;  %v1363_v53 = vld.sshfl [vmem:[#allocation7 + $0x20] sm:$0x33 pattern:$0x76325410] }
 0x3b3   : > { %p1680_p1 = pneg %p1679_p2  ;;  %p1686_p9 = por %p1685_p0, %p1684_p4 }
 0x3b5   : > { %p1687_p8 = pnand %p1686_p9, %p1680_p1 }
 0x3ed   : > { %v965_v32 = vpop.permute.xlu1 %964  ;;  %v943_v54 = vpop.permute.xlu0 %942 }
 0x3f1   : > { %v988_v55 = vpop.permute.xlu1 %987  ;;  %v945_v57 = vpop.permute.xlu0 %944 }
 0x3f2   : > { %v946_v41 = vsel %vm316_vm0, %v943_v54, %v945_v57  ;;  %v947_v43 = vsel %vm316_vm0, %v945_v57, %v943_v54 }
 0x3f3   : > { %v960_v8 = vmul.f32 %v1356_v61, %v947_v43  ;;  %v961_v9 = vmul.f32 %v957_v1, %v946_v41  ;;  %v1118_v61 = vcombine.high %v1363_v53, %v1363_v53 }
 0x3f5   : > { %v1011_v59 = vpop.permute.xlu1 %1010  ;;  %v967_v60 = vpop.permute.xlu0 %966  ;;  %v962_v26 = vadd.f32 %v960_v8, %v940_v4  ;;  %v963_v18 = vadd.f32 %v961_v9, %v941_v58 }
 0x3f6   : > { %v968_v56 = vsel %vm329_vm1, %v965_v32, %v967_v60  ;;  %v969_v6 = vsel %vm329_vm1, %v967_v60, %v965_v32 }
 0x3f7   : > { %v983_v15 = vmul.f32 %v1357_v0, %v969_v6  ;;  %v984_v16 = vmul.f32 %v980_v49, %v968_v56 }
 0x3f9   : > { %v990_v63 = vpop.permute.xlu0 %989  ;;  %v1034_v2 = vpop.permute.xlu1 %1033  ;;  %v985_v34 = vadd.f32 %v983_v15, %v962_v26  ;;  %v986_v35 = vadd.f32 %v984_v16, %v963_v18 }
 0x3fa   : > { %v991_v13 = vsel %vm343_vm2, %v988_v55, %v990_v63  ;;  %v992_v14 = vsel %vm343_vm2, %v990_v63, %v988_v55 }
 0x3fb   : > { %v1006_v27 = vmul.f32 %v1358_v3, %v992_v14  ;;  %v1007_v28 = vmul.f32 %v1003_v11, %v991_v13 }
 0x3fd   : > { %v1013_v5 = vpop.permute.xlu0 %1012  ;;  %v1057_v19 = vpop.permute.xlu1 %1056  ;;  %v1008_v46 = vadd.f32 %v1006_v27, %v985_v34  ;;  %v1009_v47 = vadd.f32 %v1007_v28, %v986_v35 }
 0x3fe   : > { %v1014_v24 = vsel %vm357_vm3, %v1011_v59, %v1013_v5  ;;  %v1015_v17 = vsel %vm357_vm3, %v1013_v5, %v1011_v59 }
 0x3ff   : > { %v1029_v36 = vmul.f32 %v1359_v7, %v1015_v17  ;;  %v1030_v37 = vmul.f32 %v1026_v50, %v1014_v24 }
 0x401   : > { %v1036_v21 = vpop.permute.xlu0 %1035  ;;  %v1080_v48 = vpop.permute.xlu1 %1079  ;;  %v1031_v40 = vadd.f32 %v1029_v36, %v1008_v46  ;;  %v1032_v32 = vadd.f32 %v1030_v37, %v1009_v47 }
 0x402   : > { %v1037_v30 = vsel %vm371_vm4, %v1034_v2, %v1036_v21  ;;  %v1038_v31 = vsel %vm371_vm4, %v1036_v21, %v1034_v2 }
 0x403   : > { %v1052_v52 = vmul.f32 %v1360_v12, %v1037_v30  ;;  %v1053_v39 = vmul.f32 %v1049_v25, %v1038_v31 }
 0x405   : > { %v1059_v38 = vpop.permute.xlu0 %1058  ;;  %v1054_v62 = vadd.f32 %v1052_v52, %v1031_v40  ;;  %v1055_v63 = vadd.f32 %v1053_v39, %v1032_v32  ;;  %v1103_v2 = vpop.permute.xlu1 %1102 }
 0x406   : > { %v1060_v20 = vsel %vm385_vm5, %v1057_v19, %v1059_v38  ;;  %v1061_v44 = vsel %vm385_vm5, %v1059_v38, %v1057_v19 }
 0x407   : > { %v1075_v54 = vmul.f32 %v1361_v51, %v1060_v20  ;;  %v1076_v55 = vmul.f32 %v1072_v33, %v1061_v44 }
 0x409   : > { %v1082_v57 = vpop.permute.xlu0 %1081  ;;  %v1077_v42 = vadd.f32 %v1075_v54, %v1054_v62  ;;  %v1078_v41 = vadd.f32 %v1076_v55, %v1055_v63 }
 0x40a   : > { %v1083_v59 = vsel %vm399_vm6, %v1080_v48, %v1082_v57  ;;  %v1084_v60 = vsel %vm399_vm6, %v1082_v57, %v1080_v48 }
 0x40b   : > { %v1098_v0 = vmul.f32 %v1362_v29, %v1083_v59  ;;  %v1099_v1 = vmul.f32 %v1095_v45, %v1084_v60 }
 0x40d   : > { %v1105_v43 = vpop.permute.xlu0 %1104  ;;  %v1100_v5 = vadd.f32 %v1098_v0, %v1077_v42  ;;  %v1101_v56 = vadd.f32 %v1099_v1, %v1078_v41 }
 0x40e   : > { %v1106_v3 = vsel %vm413_vm7, %v1103_v2, %v1105_v43  ;;  %v1107_v49 = vsel %vm413_vm7, %v1105_v43, %v1103_v2 }
 0x40f   : > { %v1121_v6 = vmul.f32 %v1363_v53, %v1106_v3  ;;  %v1122_v7 = vmul.f32 %v1118_v61, %v1107_v49 }
 0x411   : > { %v1123_v8 = vadd.f32 %v1121_v6, %v1100_v5  ;;  %v1124_v9 = vadd.f32 %v1122_v7, %v1101_v56 }
 0x413   : > { %v1126_v11 = vsel %vm1125_vm10, %v1123_v8, 0.0  ;;  %v1133_v12 = vsel %vm1125_vm10, %v1124_v9, 0.0 }
 0x414   : > { %v1127_v58 = vrot.slane %v1126_v11, 4  ;;  %v1134_v13 = vrot.slane %v1133_v12, 4 }
 0x416   : > { %v1128_v14 = vadd.f32 %v1127_v58, %v1126_v11  ;;  %v1135_v4 = vadd.f32 %v1134_v13, %v1133_v12 }
 0x418   : > { %v1129_v15 = vrot.slane %v1128_v14, 2  ;;  %v1136_v16 = vrot.slane %v1135_v4, 2 }
 0x41a   : > { %v1130_v19 = vadd.f32 %v1129_v15, %v1128_v14  ;;  %v1137_v50 = vadd.f32 %v1136_v16, %v1135_v4 }
 0x41c   : > { %v1131_v23 = vrot.slane %v1130_v19, 1  ;;  %v1138_v21 = vrot.slane %v1137_v50, 1 }
 0x41e   : > { %v1132_v51 = vadd.f32 %v1131_v23, %v1130_v19  ;;  %v1139_v24 = vadd.f32 %v1138_v21, %v1137_v50 }
 0x420   : > { %v1364_v17 = vmul.f32 -1.442695, %v1132_v51  ;;  %v1365_v25 = vmul.f32 -1.442695, %v1139_v24 }
 0x422   : > { %1527 = vpow2.f32 %v1364_v17 }
 0x423   : > { %1529 = vpow2.f32 %v1365_v25 }
 0x42c   : > { %v1528_v26 = vpop.eup %1527 }
 0x42d   : > { %v1530_v18 = vpop.eup %1529  ;;  %v1146_v27 = vadd.f32 1.0, %v1528_v26 }
 0x42e   : > { %v1147_v28 = vadd.f32 1.0, %v1530_v18 }
 0x42f   : > { %1531 = vrcp.f32 %v1146_v27 }
 0x430   : > { %1533 = vrcp.f32 %v1147_v28 }
 0x439   : > { %v1532_v29 = vpop.eup %1531 }
 0x43a   : > { %v1534_v30 = vpop.eup %1533  ;;  %v1152_v31 = vmul.f32 %v1532_v29, %v2241_v22 }
 0x43b   : > { %v1153_v33 = vmul.f32 %v1534_v30, %v2244_v10 }
 0x43d   : > { %v1156_v34 = vcombine.low %v1152_v31, %v1153_v33 }
 0x43f   : > { %1158 = vst [vmem:[%s288_s6] sm:$0xff] %v1156_v34 }
 0x440   : > { %1690 = shalt.err (!%p1687_p8)
}
 0x441   : > { %s1691_s14 = scalar_lea.hbm %s2360_s12, 128  ;;  %s1695_s29 = scalar_lea.hbm %s2408_s4, 256 }
 0x442   : > { %p1692_p11 = scmp.ne.s32.totalorder %s2360_s12, %s1691_s14  ;;  %p1696_p10 = scmp.lt.u32.totalorder %s2360_s12, %s2408_s4 }
 0x443   : > { %p1697_p3 = scmp.lt.u32.totalorder %s1695_s29, %s1691_s14  ;;  %p1699_p12 = scmp.lt.u32.totalorder %s1691_s14, %s2360_s12 }
 0x444   : > { %p1693_p13 = pnand %p1692_p11, %p1964_p5 }
 0x445   : > { %p1698_p7 = por %p1697_p3, %p1696_p10 }
 0x446   : > { %p1694_p6 = pneg %p1693_p13 }
 0x447   : > { %p1700_p2 = por %p1699_p12, %p1698_p7 }
 0x449   : > { %p1701_p1 = pnand %p1700_p2, %p1694_p6 }
 0x44b   : > { %1704 = shalt.err (!%p1701_p1)
}
 0x44c   : > { %1392 = dma.vmem_to_hbm [thread:$0]  (%p1964_p5), %s2362_s10, 128, %s2360_s12, %s1174_s15  }
 0x44d PF: > { %s1219_s11 = sand.u32 1, %s1743_s18   ;;  %p2427_p4 = scmp.ne.s32.totalorder %s2414_s25, 0 }
 0x44e   : > { %p2428_p0 = scmp.ge.s32.totalorder %s1755_s21, 2  ;;  %s1220_s6 = scalar_lea.sflag [#allocation4], %s1219_s11 }
 0x450   : > { %p1411_p9 = pnand %p2428_p0, %p2427_p4 }
 0x452   : > { %1734 = dma.done.wait (!%p1411_p9), %s1220_s6, 128  }
 0x453   : > { %1736 = vsyncadd (!%p1411_p9), %s1220_s6, 4294967168  ;;  %s1229_s28 = scalar_lea.sflag [#allocation12], %s1219_s11 }
 0x454   : > { %1738 = dma.done.wait (!%p1411_p9), %s1229_s28, 64  }
 0x455   : > { %1740 = vsyncadd (!%p1411_p9), %s1229_s28, 4294967232  ;;  %p24_p5 = scmp.ge.s32.totalorder %s1950_s16, 4   ;;  %s2429_s18 = smov %s1747_s19 }
 0x456   : > { %s2430_s19 = smov %s1751_s20  ;;  %s2431_s20 = smov %s1960_s30 }
 0x457   : > { %s2432_s21 = smov %s1950_s16  ;;  %26 = sbr.rel (!%p24_p5) target bundleno = 9 (0x9), region = 126 }
 0x45e   :  { %1234 = vsyncpa [#allocation3], 1 }
 0x45f   :  { %1236 = vsyncpa [#allocation3 + $0x1], 1 }
 0x460   :  { %1237 = vsyncpa [#allocation6], 1 }
 0x461   :  { %1238 = vsyncpa [#allocation9], 1 }
 0x462   :  { %1239 = vsyncpa [#allocation4], 1 }
 0x463   :  { %1241 = vsyncpa [#allocation4 + $0x1], 1 }
 0x464   :  { %1242 = vsyncpa [#allocation12], 1 }
 0x465   :  { %1244 = vsyncpa [#allocation12 + $0x1], 1 }

</bundles_post_ra>
